<compile_context>
chip_gen: v5e
topology: v5e:2x2
jax: 0.10.0
libtpu: 0.0.40
codegen_flags: <defaults>
</compile_context>

<pallas_src>
import math

import jax
import jax.numpy as jnp
from jax import lax
from jax.experimental import pallas as pl
from jax.experimental.pallas import tpu as pltpu

# Feature index conventions (gridfm_graphkit FEATURES_IDX)
PD, QD, VM, VA, PG, QG = 0, 1, 2, 3, 4, 5
# node-type one-hot columns inside x
PQ, PV, REF = 6, 7, 8

NEG_SLOPE = 0.01            # nn.LeakyReLU default negative_slope
CORRECTION_FACTOR = 0.05
_TN = (((0,), (0,)), ((), ()))   # contract dim 0 of both operands (scatter-sum)


def _leaky(z):
    return jnp.where(z > 0, z, NEG_SLOPE * z)


def _mmf(a, b):
    return jnp.dot(a, b, preferred_element_type=jnp.float32)


def _bf(a):
    return a.astype(jnp.bfloat16)


# ---------------------------------------------------------------------------
# Fused forward kernel: encoder (step 0) + MP layer (each step) + head (last).
# ---------------------------------------------------------------------------
def _make_fused_kernel(H, rem):
    h2 = H // 2

    def kernel(x_ref, ea_ref, gs_ref, gd_ref,
               ew1, eb1, ew2, eb2,
               w1s, w1d, w1e, b1, w2, b2,
               n1h, n1a, bn1, n2, bn2,
               dw1, db1, dw2, db2,
               qw1, qb1, qw2, qb2,
               o_ref, h_ref):
        layer = pl.program_id(0)
        num_layers = pl.num_programs(0)

        # ---- node encoder (step 0 only): h = Linear(LeakyReLU(Linear(x)))
        @pl.when(layer == 0)
        def _encode():
            xb = _bf(x_ref[...])
            z = _leaky(_mmf(xb, ew1[...]) + eb1[...])
            h_ref[...] = _mmf(_bf(z), ew2[...]) + eb2[...]

        # ---- one MessagePassingLayer (every step); h persists in VMEM scratch
        h = h_ref[...]                      # (N, H) f32
        hb = _bf(h)
        gs = gs_ref[...]                    # (E, N) bf16 one-hot(src)
        gd = gd_ref[...]                    # (E, N) bf16 one-hot(dst)
        eab = _bf(ea_ref[...])              # (E, edge_dim)

        src_f = _mmf(gs, hb)                # (E, H) == h[src]
        dst_f = _mmf(gd, hb)                # (E, H) == h[dst]

        # fused first linear of the edge MLPs: [src|dst|ea] @ W1_cat (no concat)
        z = (_mmf(_bf(src_f), w1s[...]) + _mmf(_bf(dst_f), w1d[...])
             + _mmf(eab, w1e[...]) + b1[...])
        z = _leaky(z)                       # (E, Wc)
        # fused (block-diagonal) second linear: [p_msg | v_msg (| edge_msg)]
        m2 = _mmf(_bf(z), w2[...]) + b2[...]

        gdf = gd.astype(jnp.float32)
        if rem > 0:
            pv = m2[:, :2 * h2]
            msg_head = _leaky(m2[:, 2 * h2:])[:, :rem]
            aggr_e = lax.dot_general(gdf, msg_head, _TN,
                                     preferred_element_type=jnp.float32)
        else:
            pv = m2                          # even H: edge_mlp slice has width 0
        # SumAggregation over dst == transposed contraction (no materialized gd^T)
        aggr_pv = lax.dot_general(gdf, pv, _TN, preferred_element_type=jnp.float32)

        n1a_v = n1a[...]
        if rem > 0:
            acc = (_mmf(hb, n1h[...])
                   + _mmf(_bf(aggr_pv), n1a_v[rem:, :])
                   + _mmf(_bf(aggr_e), n1a_v[:rem, :]))
        else:
            acc = _mmf(hb, n1h[...]) + _mmf(_bf(aggr_pv), n1a_v)
        z1 = _leaky(acc + bn1[...])
        h_ref[...] = _leaky(_mmf(_bf(z1), n2[...]) + bn2[...])

        # ---- decoder + equilibrium correction + power flow (last step only)
        @pl.when(layer == num_layers - 1)
        def _head():
            hb2 = _bf(h_ref[...])
            zd = _leaky(_mmf(hb2, dw1[...]) + db1[...])
            pred = _mmf(_bf(zd), dw2[...]) + db2[...]             # (N, out_dim)
            zq = _leaky(_mmf(hb2, qw1[...]) + qb1[...])
            corr = _mmf(_bf(zq), qw2[...]) + qb2[...]             # (N, out_dim)

            xv = x_ref[...]
            m_pq = (xv[:, PQ:PQ + 1] == 1.0).astype(jnp.float32)  # (N, 1)
            m_pv = (xv[:, PV:PV + 1] == 1.0).astype(jnp.float32)
            m_rf = (xv[:, REF:REF + 1] == 1.0).astype(jnp.float32)

            col = lax.broadcasted_iota(jnp.int32, corr.shape, 1)
            is_vm = (col == VM).astype(jnp.float32)
            is_va = (col == VA).astype(jnp.float32)
            is_qg = (col == QG).astype(jnp.float32)
            is_pg = (col == PG).astype(jnp.float32)

            # zero VM where PV|REF, VA where REF (masked correction)
            sc = corr * (1.0 - is_vm * jnp.maximum(m_pv, m_rf)) * (1.0 - is_va * m_rf)
            # correction is invariant over the reference's 3-iteration loop
            pred = pred - sc
            pred = pred - sc
            pred = pred - sc

            # ---- AC power flow imbalances (kept f32 for the physics)
            gsf = gs.astype(jnp.float32)
            vmva = pred[:, VM:VA + 1]                             # (N, 2) [vm, va]
            s_e = _mmf(gsf, vmva)                                 # (E, 2) at src
            d_e = _mmf(gdf, vmva)                                 # (E, 2) at dst
            ad = s_e[:, 1:2] - d_e[:, 1:2]
            cs, sn = jnp.cos(ad), jnp.sin(ad)
            vv = s_e[:, 0:1] * d_e[:, 0:1]
            eav = ea_ref[...]
            g, b_ = eav[:, 0:1], eav[:, 1:2]
            p_flow = vv * (g * cs + b_ * sn)
            q_flow = vv * (g * sn - b_ * cs)
            # scatter-add over src == transposed contraction with one-hot(src)
            p_calc = lax.dot_general(gsf, p_flow, _TN,
                                     preferred_element_type=jnp.float32)
            q_calc = lax.dot_general(gsf, q_flow, _TN,
                                     preferred_element_type=jnp.float32)
            p_imb = pred[:, PG:PG + 1] - pred[:, PD:PD + 1] - p_calc
            q_imb = pred[:, QG:QG + 1] - pred[:, QD:QD + 1] - q_calc

            upd = (is_vm * (m_pq * q_imb) + is_qg * (m_pv * q_imb)
                   + is_pg * p_imb) * CORRECTION_FACTOR
            o_ref[...] = pred + upd

    return kernel


# ---------------------------------------------------------------------------
# Full forward pass: one fused pallas_call with a layer grid.
# ---------------------------------------------------------------------------
@jax.jit
def forward(prep, x, pe, edge_index, edge_attr):
    del pe  # accepted for signature parity, unused by the reference forward
    n = x.shape[0]
    src, dst = edge_index[0], edge_index[1]
    # one-hot gather matrices (0/1 exact in bf16); transposes are NOT materialized
    gs = jax.nn.one_hot(src, n, dtype=jnp.bfloat16)    # (E, N)
    gd = jax.nn.one_hot(dst, n, dtype=jnp.bfloat16)    # (E, N)

    ew1, eb1, ew2, eb2 = prep["enc"]
    dw1, db1, dw2, db2 = prep["dec"]
    qw1, qb1, qw2, qb2 = prep["eq"]
    lw = prep["layers"]

    H = ew2.shape[0]
    rem = H - 2 * (H // 2)
    num_layers = lw["w1s"].shape[0]
    out_dim = dw2.shape[1]

    whole = lambda a: pl.BlockSpec(a.shape, lambda l: (0,) * a.ndim)
    per_layer = lambda a: pl.BlockSpec((None,) + a.shape[1:], lambda l: (l, 0, 0))

    grid_spec = pltpu.PrefetchScalarGridSpec(
        num_scalar_prefetch=0,
        grid=(num_layers,),
        in_specs=[
            whole(x), whole(edge_attr), whole(gs), whole(gd),
            whole(ew1), whole(eb1), whole(ew2), whole(eb2),
            per_layer(lw["w1s"]), per_layer(lw["w1d"]), per_layer(lw["w1e"]),
            per_layer(lw["b1"]), per_layer(lw["w2"]), per_layer(lw["b2"]),
            per_layer(lw["n1h"]), per_layer(lw["n1a"]), per_layer(lw["bn1"]),
            per_layer(lw["n2"]), per_layer(lw["bn2"]),
            whole(dw1), whole(db1), whole(dw2), whole(db2),
            whole(qw1), whole(qb1), whole(qw2), whole(qb2),
        ],
        out_specs=pl.BlockSpec((n, out_dim), lambda l: (0, 0)),
        scratch_shapes=[pltpu.VMEM((n, H), jnp.float32)],  # h, resident all layers
    )
    return pl.pallas_call(
        _make_fused_kernel(H, rem),
        out_shape=jax.ShapeDtypeStruct((n, out_dim), jnp.float32),
        grid_spec=grid_spec,
        compiler_params=pltpu.CompilerParams(
            dimension_semantics=("arbitrary",),  # layers are sequential (h carried)
            vmem_limit_bytes=32 * 1024 * 1024),
    )(x, edge_attr, gs, gd,
      ew1, eb1, ew2, eb2,
      lw["w1s"], lw["w1d"], lw["w1e"], lw["b1"], lw["w2"], lw["b2"],
      lw["n1h"], lw["n1a"], lw["bn1"], lw["n2"], lw["bn2"],
      dw1, db1, dw2, db2, qw1, qb1, qw2, qb2)


# ---------------------------------------------------------------------------
# Parameter init (Kaiming normal, zero biases) and host-side fusion/packing.
# Weights stored as (fan_in, fan_out) so kernels compute x @ W + b.
# ---------------------------------------------------------------------------
def _kaiming(key, fan_in, fan_out):
    std = math.sqrt(2.0 / fan_in)
    return (std * jax.random.normal(key, (fan_in, fan_out))).astype(jnp.float32)


def init_params(key, input_dim, hidden_dim, output_dim, edge_dim, num_layers, mask_dim=6):
    H, h2 = hidden_dim, hidden_dim // 2
    d_in = 2 * H + edge_dim
    keys = iter(jax.random.split(key, 8 * num_layers + 8))

    def lin(fi, fo):
        return _kaiming(next(keys), fi, fo), jnp.zeros((1, fo), jnp.float32)

    p = {}
    p["enc_w1"], p["enc_b1"] = lin(input_dim, H)
    p["enc_w2"], p["enc_b2"] = lin(H, H)
    p["layers"] = []
    for _ in range(num_layers):
        lp = {}
        lp["we1"], lp["be1"] = lin(d_in, H)
        lp["we2"], lp["be2"] = lin(H, H)
        lp["wp1"], lp["bp1"] = lin(d_in, h2)
        lp["wp2"], lp["bp2"] = lin(h2, h2)
        lp["wv1"], lp["bv1"] = lin(d_in, h2)
        lp["wv2"], lp["bv2"] = lin(h2, h2)
        lp["wn1"], lp["bn1"] = lin(2 * H, H)
        lp["wn2"], lp["bn2"] = lin(H, H)
        p["layers"].append(lp)
    p["dec_w1"], p["dec_b1"] = lin(H, H)
    p["dec_w2"], p["dec_b2"] = lin(H, output_dim)
    p["eq_w1"], p["eq_b1"] = lin(H, h2)
    p["eq_w2"], p["eq_b2"] = lin(h2, output_dim)
    p["mask_value"] = jnp.zeros((mask_dim,), jnp.float32)  # unused (learn_mask=False)
    return p


def prepare_params(params):
    """Fuse (p/v[/e] edge MLPs), stack per-layer weights, and cast MXU operands to bf16."""
    H = params["enc_w2"].shape[0]
    h2 = H // 2
    rem = H - 2 * h2

    w1s, w1d, w1e, b1, w2bd, b2 = [], [], [], [], [], []
    n1h, n1a, bn1, n2, bn2 = [], [], [], [], []
    for lp in params["layers"]:
        mats = [lp["wp1"], lp["wv1"]] + ([lp["we1"]] if rem > 0 else [])
        cat1 = jnp.concatenate(mats, axis=1)                 # (2H+edge, Wc)
        w1s.append(cat1[0:H, :])
        w1d.append(cat1[H:2 * H, :])
        w1e.append(cat1[2 * H:, :])
        b1.append(jnp.concatenate(
            [lp["bp1"], lp["bv1"]] + ([lp["be1"]] if rem > 0 else []), axis=1))
        wc = cat1.shape[1]
        bd = jnp.zeros((wc, wc), jnp.float32)
        bd = bd.at[0:h2, 0:h2].set(lp["wp2"])
        bd = bd.at[h2:2 * h2, h2:2 * h2].set(lp["wv2"])
        if rem > 0:
            bd = bd.at[2 * h2:, 2 * h2:].set(lp["we2"])
        w2bd.append(bd)
        b2.append(jnp.concatenate(
            [lp["bp2"], lp["bv2"]] + ([lp["be2"]] if rem > 0 else []), axis=1))
        n1h.append(lp["wn1"][0:H, :])
        n1a.append(lp["wn1"][H:2 * H, :])
        bn1.append(lp["bn1"])
        n2.append(lp["wn2"])
        bn2.append(lp["bn2"])

    def st(xs, as_bf16):
        a = jnp.stack(xs, axis=0)
        return a.astype(jnp.bfloat16) if as_bf16 else a.astype(jnp.float32)

    return {
        "enc": (_bf(params["enc_w1"]), params["enc_b1"],
                _bf(params["enc_w2"]), params["enc_b2"]),
        "dec": (_bf(params["dec_w1"]), params["dec_b1"],
                _bf(params["dec_w2"]), params["dec_b2"]),
        "eq": (_bf(params["eq_w1"]), params["eq_b1"],
               _bf(params["eq_w2"]), params["eq_b2"]),
        "layers": {
            "w1s": st(w1s, True), "w1d": st(w1d, True), "w1e": st(w1e, True),
            "b1": st(b1, False), "w2": st(w2bd, True), "b2": st(b2, False),
            "n1h": st(n1h, True), "n1a": st(n1a, True), "bn1": st(bn1, False),
            "n2": st(n2, True), "bn2": st(bn2, False),
        },
    }


if __name__ == "__main__":
    input_dim, hidden_dim, output_dim, edge_dim, num_layers = 9, 32, 6, 2, 5
    N, E = 16, 24

    key = jax.random.PRNGKey(0)
    kp, k1, k2, k3, k4, k5, k6 = jax.random.split(key, 7)
    params = init_params(kp, input_dim, hidden_dim, output_dim, edge_dim, num_layers)
    prep = prepare_params(params)

    src = jax.random.randint(k1, (E,), 0, N)
    dst = jax.random.randint(k2, (E,), 0, N)
    edge_index = jnp.stack([src, dst])                                      # (2, E)
    feats = jax.random.normal(k3, (N, 6), jnp.float32)                      # PD,QD,VM,VA,PG,QG
    node_type = jax.random.randint(k4, (N,), 0, 3)
    x = jnp.concatenate(
        [feats, jax.nn.one_hot(node_type, 3, dtype=jnp.float32)], axis=1)   # (N, 9)
    edge_attr = 0.1 * jax.random.normal(k5, (E, edge_dim), jnp.float32)     # (E, 2): [g, b]
    pe = jax.random.normal(k6, (N, 8), jnp.float32)                         # unused by forward

    pred = forward(prep, x, pe, edge_index, edge_attr)
    jax.block_until_ready(pred)
    assert pred.shape == (N, output_dim) and pred.dtype == jnp.float32
    assert bool(jnp.all(jnp.isfinite(pred)))
    print("KERNEL_OK")
</pallas_src>

<mosaic_0001>
module attributes {stable_mosaic.version = 11 : i64} {
  func.func @kernel(%arg0: i32, %arg1: memref<16x9xf32, #tpu.memory_space<vmem>>, %arg2: memref<24x2xf32, #tpu.memory_space<vmem>>, %arg3: memref<24x16xbf16, #tpu.memory_space<vmem>>, %arg4: memref<24x16xbf16, #tpu.memory_space<vmem>>, %arg5: memref<9x32xbf16, #tpu.memory_space<vmem>>, %arg6: memref<1x32xf32, #tpu.memory_space<vmem>>, %arg7: memref<32x32xbf16, #tpu.memory_space<vmem>>, %arg8: memref<1x32xf32, #tpu.memory_space<vmem>>, %arg9: memref<1x32x32xbf16, #tpu.memory_space<vmem>>, %arg10: memref<1x32x32xbf16, #tpu.memory_space<vmem>>, %arg11: memref<1x2x32xbf16, #tpu.memory_space<vmem>>, %arg12: memref<1x1x32xf32, #tpu.memory_space<vmem>>, %arg13: memref<1x32x32xbf16, #tpu.memory_space<vmem>>, %arg14: memref<1x1x32xf32, #tpu.memory_space<vmem>>, %arg15: memref<1x32x32xbf16, #tpu.memory_space<vmem>>, %arg16: memref<1x32x32xbf16, #tpu.memory_space<vmem>>, %arg17: memref<1x1x32xf32, #tpu.memory_space<vmem>>, %arg18: memref<1x32x32xbf16, #tpu.memory_space<vmem>>, %arg19: memref<1x1x32xf32, #tpu.memory_space<vmem>>, %arg20: memref<32x32xbf16, #tpu.memory_space<vmem>>, %arg21: memref<1x32xf32, #tpu.memory_space<vmem>>, %arg22: memref<32x6xbf16, #tpu.memory_space<vmem>>, %arg23: memref<1x6xf32, #tpu.memory_space<vmem>>, %arg24: memref<32x16xbf16, #tpu.memory_space<vmem>>, %arg25: memref<1x16xf32, #tpu.memory_space<vmem>>, %arg26: memref<16x6xbf16, #tpu.memory_space<vmem>>, %arg27: memref<1x6xf32, #tpu.memory_space<vmem>>, %arg28: memref<16x6xf32, #tpu.memory_space<vmem>>, %arg29: memref<16x32xf32, #tpu.memory_space<vmem>>) attributes {dimension_semantics = [#tpu.dimension_semantics<arbitrary>], iteration_bounds = array<i64: 5>, scalar_prefetch = 0 : i64, scratch_operands = 1 : i64, tpu.core_type = #tpu.core_type<tc>, window_params = [{pipeline_mode = #tpu.pipeline_mode<synchronous>, transform_indices = @transform_0, window_bounds = array<i64: 16, 9>}, {pipeline_mode = #tpu.pipeline_mode<synchronous>, transform_indices = @transform_1, window_bounds = array<i64: 24, 2>}, {pipeline_mode = #tpu.pipeline_mode<synchronous>, transform_indices = @transform_2, window_bounds = array<i64: 24, 16>}, {pipeline_mode = #tpu.pipeline_mode<synchronous>, transform_indices = @transform_3, window_bounds = array<i64: 24, 16>}, {pipeline_mode = #tpu.pipeline_mode<synchronous>, transform_indices = @transform_4, window_bounds = array<i64: 9, 32>}, {pipeline_mode = #tpu.pipeline_mode<synchronous>, transform_indices = @transform_5, window_bounds = array<i64: 1, 32>}, {pipeline_mode = #tpu.pipeline_mode<synchronous>, transform_indices = @transform_6, window_bounds = array<i64: 32, 32>}, {pipeline_mode = #tpu.pipeline_mode<synchronous>, transform_indices = @transform_7, window_bounds = array<i64: 1, 32>}, {transform_indices = @transform_8, window_bounds = array<i64: 1, 32, 32>}, {transform_indices = @transform_9, window_bounds = array<i64: 1, 32, 32>}, {transform_indices = @transform_10, window_bounds = array<i64: 1, 2, 32>}, {transform_indices = @transform_11, window_bounds = array<i64: 1, 1, 32>}, {transform_indices = @transform_12, window_bounds = array<i64: 1, 32, 32>}, {transform_indices = @transform_13, window_bounds = array<i64: 1, 1, 32>}, {transform_indices = @transform_14, window_bounds = array<i64: 1, 32, 32>}, {transform_indices = @transform_15, window_bounds = array<i64: 1, 32, 32>}, {transform_indices = @transform_16, window_bounds = array<i64: 1, 1, 32>}, {transform_indices = @transform_17, window_bounds = array<i64: 1, 32, 32>}, {transform_indices = @transform_18, window_bounds = array<i64: 1, 1, 32>}, {pipeline_mode = #tpu.pipeline_mode<synchronous>, transform_indices = @transform_19, window_bounds = array<i64: 32, 32>}, {pipeline_mode = #tpu.pipeline_mode<synchronous>, transform_indices = @transform_20, window_bounds = array<i64: 1, 32>}, {pipeline_mode = #tpu.pipeline_mode<synchronous>, transform_indices = @transform_21, window_bounds = array<i64: 32, 6>}, {pipeline_mode = #tpu.pipeline_mode<synchronous>, transform_indices = @transform_22, window_bounds = array<i64: 1, 6>}, {pipeline_mode = #tpu.pipeline_mode<synchronous>, transform_indices = @transform_23, window_bounds = array<i64: 32, 16>}, {pipeline_mode = #tpu.pipeline_mode<synchronous>, transform_indices = @transform_24, window_bounds = array<i64: 1, 16>}, {pipeline_mode = #tpu.pipeline_mode<synchronous>, transform_indices = @transform_25, window_bounds = array<i64: 16, 6>}, {pipeline_mode = #tpu.pipeline_mode<synchronous>, transform_indices = @transform_26, window_bounds = array<i64: 1, 6>}, {pipeline_mode = #tpu.pipeline_mode<synchronous>, transform_indices = @transform_27, window_bounds = array<i64: 16, 6>}]} {
    %c0_i32 = arith.constant 0 : i32
    %0 = arith.cmpi eq, %arg0, %c0_i32 : i32
    %1 = arith.extui %0 : i1 to i32
    %c0_i32_0 = arith.constant 0 : i32
    %2 = arith.cmpi ne, %1, %c0_i32_0 : i32
    scf.if %2 {
      %c0_59 = arith.constant 0 : index
      %c0_60 = arith.constant 0 : index
      %77 = vector.load %arg1[%c0_59, %c0_60] : memref<16x9xf32, #tpu.memory_space<vmem>>, vector<16x9xf32>
      %78 = arith.truncf %77 : vector<16x9xf32> to vector<16x9xbf16>
      %c0_61 = arith.constant 0 : index
      %c0_62 = arith.constant 0 : index
      %79 = vector.load %arg5[%c0_61, %c0_62] : memref<9x32xbf16, #tpu.memory_space<vmem>>, vector<9x32xbf16>
      %cst_63 = arith.constant dense<0.000000e+00> : vector<16x32xf32>
      %80 = tpu.matmul %78, %79, %cst_63 {dimension_numbers = #tpu.dot_dimension_numbers<[1], [0], [0], [1], [0, 0, 1, 1], [], []>} : vector<16x9xbf16>, vector<9x32xbf16>, vector<16x32xf32> -> vector<16x32xf32>
      %c0_64 = arith.constant 0 : index
      %c0_65 = arith.constant 0 : index
      %81 = vector.load %arg6[%c0_64, %c0_65] : memref<1x32xf32, #tpu.memory_space<vmem>>, vector<1x32xf32>
      %82 = vector.broadcast %81 : vector<1x32xf32> to vector<16x32xf32>
      %83 = arith.addf %80, %82 : vector<16x32xf32>
      %cst_66 = arith.constant 0.000000e+00 : f32
      %84 = vector.broadcast %cst_66 : f32 to vector<16x32xf32>
      %85 = arith.cmpf ogt, %83, %84 : vector<16x32xf32>
      %cst_67 = arith.constant 0.00999999977 : f32
      %86 = vector.broadcast %cst_67 : f32 to vector<16x32xf32>
      %87 = arith.mulf %86, %83 : vector<16x32xf32>
      %88 = arith.select %85, %83, %87 : vector<16x32xi1>, vector<16x32xf32>
      %89 = arith.truncf %88 : vector<16x32xf32> to vector<16x32xbf16>
      %c0_68 = arith.constant 0 : index
      %c0_69 = arith.constant 0 : index
      %90 = vector.load %arg7[%c0_68, %c0_69] : memref<32x32xbf16, #tpu.memory_space<vmem>>, vector<32x32xbf16>
      %cst_70 = arith.constant dense<0.000000e+00> : vector<16x32xf32>
      %91 = tpu.matmul %89, %90, %cst_70 {dimension_numbers = #tpu.dot_dimension_numbers<[1], [0], [0], [1], [0, 0, 1, 1], [], []>} : vector<16x32xbf16>, vector<32x32xbf16>, vector<16x32xf32> -> vector<16x32xf32>
      %c0_71 = arith.constant 0 : index
      %c0_72 = arith.constant 0 : index
      %92 = vector.load %arg8[%c0_71, %c0_72] : memref<1x32xf32, #tpu.memory_space<vmem>>, vector<1x32xf32>
      %93 = vector.broadcast %92 : vector<1x32xf32> to vector<16x32xf32>
      %94 = arith.addf %91, %93 : vector<16x32xf32>
      %c0_73 = arith.constant 0 : index
      %c0_74 = arith.constant 0 : index
      %95 = vector.load %arg29[%c0_73, %c0_74] : memref<16x32xf32, #tpu.memory_space<vmem>>, vector<16x32xf32>
      tpu.vector_store %arg29[%c0_73, %c0_74], %94 {strides = array<i32>} : memref<16x32xf32, #tpu.memory_space<vmem>>, vector<16x32xf32>,
    } else {
    }
    %c0 = arith.constant 0 : index
    %c0_1 = arith.constant 0 : index
    %3 = vector.load %arg29[%c0, %c0_1] : memref<16x32xf32, #tpu.memory_space<vmem>>, vector<16x32xf32>
    %4 = arith.truncf %3 : vector<16x32xf32> to vector<16x32xbf16>
    %c0_2 = arith.constant 0 : index
    %c0_3 = arith.constant 0 : index
    %5 = vector.load %arg3[%c0_2, %c0_3] : memref<24x16xbf16, #tpu.memory_space<vmem>>, vector<24x16xbf16>
    %c0_4 = arith.constant 0 : index
    %c0_5 = arith.constant 0 : index
    %6 = vector.load %arg4[%c0_4, %c0_5] : memref<24x16xbf16, #tpu.memory_space<vmem>>, vector<24x16xbf16>
    %c0_6 = arith.constant 0 : index
    %c0_7 = arith.constant 0 : index
    %7 = vector.load %arg2[%c0_6, %c0_7] : memref<24x2xf32, #tpu.memory_space<vmem>>, vector<24x2xf32>
    %8 = arith.truncf %7 : vector<24x2xf32> to vector<24x2xbf16>
    %cst = arith.constant dense<0.000000e+00> : vector<24x32xf32>
    %9 = tpu.matmul %5, %4, %cst {dimension_numbers = #tpu.dot_dimension_numbers<[1], [0], [0], [1], [0, 0, 1, 1], [], []>} : vector<24x16xbf16>, vector<16x32xbf16>, vector<24x32xf32> -> vector<24x32xf32>
    %cst_8 = arith.constant dense<0.000000e+00> : vector<24x32xf32>
    %10 = tpu.matmul %6, %4, %cst_8 {dimension_numbers = #tpu.dot_dimension_numbers<[1], [0], [0], [1], [0, 0, 1, 1], [], []>} : vector<24x16xbf16>, vector<16x32xbf16>, vector<24x32xf32> -> vector<24x32xf32>
    %11 = arith.truncf %9 : vector<24x32xf32> to vector<24x32xbf16>
    %c0_9 = arith.constant 0 : index
    %c0_10 = arith.constant 0 : index
    %c0_11 = arith.constant 0 : index
    %12 = vector.load %arg9[%c0_9, %c0_10, %c0_11] : memref<1x32x32xbf16, #tpu.memory_space<vmem>>, vector<1x32x32xbf16>
    %13 = vector.shape_cast %12 : vector<1x32x32xbf16> to vector<32x32xbf16>
    %cst_12 = arith.constant dense<0.000000e+00> : vector<24x32xf32>
    %14 = tpu.matmul %11, %13, %cst_12 {dimension_numbers = #tpu.dot_dimension_numbers<[1], [0], [0], [1], [0, 0, 1, 1], [], []>} : vector<24x32xbf16>, vector<32x32xbf16>, vector<24x32xf32> -> vector<24x32xf32>
    %15 = arith.truncf %10 : vector<24x32xf32> to vector<24x32xbf16>
    %c0_13 = arith.constant 0 : index
    %c0_14 = arith.constant 0 : index
    %c0_15 = arith.constant 0 : index
    %16 = vector.load %arg10[%c0_13, %c0_14, %c0_15] : memref<1x32x32xbf16, #tpu.memory_space<vmem>>, vector<1x32x32xbf16>
    %17 = vector.shape_cast %16 : vector<1x32x32xbf16> to vector<32x32xbf16>
    %cst_16 = arith.constant dense<0.000000e+00> : vector<24x32xf32>
    %18 = tpu.matmul %15, %17, %cst_16 {dimension_numbers = #tpu.dot_dimension_numbers<[1], [0], [0], [1], [0, 0, 1, 1], [], []>} : vector<24x32xbf16>, vector<32x32xbf16>, vector<24x32xf32> -> vector<24x32xf32>
    %19 = arith.addf %14, %18 : vector<24x32xf32>
    %c0_17 = arith.constant 0 : index
    %c0_18 = arith.constant 0 : index
    %c0_19 = arith.constant 0 : index
    %20 = vector.load %arg11[%c0_17, %c0_18, %c0_19] : memref<1x2x32xbf16, #tpu.memory_space<vmem>>, vector<1x2x32xbf16>
    %21 = vector.shape_cast %20 : vector<1x2x32xbf16> to vector<2x32xbf16>
    %cst_20 = arith.constant dense<0.000000e+00> : vector<24x32xf32>
    %22 = tpu.matmul %8, %21, %cst_20 {dimension_numbers = #tpu.dot_dimension_numbers<[1], [0], [0], [1], [0, 0, 1, 1], [], []>} : vector<24x2xbf16>, vector<2x32xbf16>, vector<24x32xf32> -> vector<24x32xf32>
    %23 = arith.addf %19, %22 : vector<24x32xf32>
    %c0_21 = arith.constant 0 : index
    %c0_22 = arith.constant 0 : index
    %c0_23 = arith.constant 0 : index
    %24 = vector.load %arg12[%c0_21, %c0_22, %c0_23] : memref<1x1x32xf32, #tpu.memory_space<vmem>>, vector<1x1x32xf32>
    %25 = vector.shape_cast %24 : vector<1x1x32xf32> to vector<1x32xf32>
    %26 = vector.broadcast %25 : vector<1x32xf32> to vector<24x32xf32>
    %27 = arith.addf %23, %26 : vector<24x32xf32>
    %cst_24 = arith.constant 0.000000e+00 : f32
    %28 = vector.broadcast %cst_24 : f32 to vector<24x32xf32>
    %29 = arith.cmpf ogt, %27, %28 : vector<24x32xf32>
    %cst_25 = arith.constant 0.00999999977 : f32
    %30 = vector.broadcast %cst_25 : f32 to vector<24x32xf32>
    %31 = arith.mulf %30, %27 : vector<24x32xf32>
    %32 = arith.select %29, %27, %31 : vector<24x32xi1>, vector<24x32xf32>
    %33 = arith.truncf %32 : vector<24x32xf32> to vector<24x32xbf16>
    %c0_26 = arith.constant 0 : index
    %c0_27 = arith.constant 0 : index
    %c0_28 = arith.constant 0 : index
    %34 = vector.load %arg13[%c0_26, %c0_27, %c0_28] : memref<1x32x32xbf16, #tpu.memory_space<vmem>>, vector<1x32x32xbf16>
    %35 = vector.shape_cast %34 : vector<1x32x32xbf16> to vector<32x32xbf16>
    %cst_29 = arith.constant dense<0.000000e+00> : vector<24x32xf32>
    %36 = tpu.matmul %33, %35, %cst_29 {dimension_numbers = #tpu.dot_dimension_numbers<[1], [0], [0], [1], [0, 0, 1, 1], [], []>} : vector<24x32xbf16>, vector<32x32xbf16>, vector<24x32xf32> -> vector<24x32xf32>
    %c0_30 = arith.constant 0 : index
    %c0_31 = arith.constant 0 : index
    %c0_32 = arith.constant 0 : index
    %37 = vector.load %arg14[%c0_30, %c0_31, %c0_32] : memref<1x1x32xf32, #tpu.memory_space<vmem>>, vector<1x1x32xf32>
    %38 = vector.shape_cast %37 : vector<1x1x32xf32> to vector<1x32xf32>
    %39 = vector.broadcast %38 : vector<1x32xf32> to vector<24x32xf32>
    %40 = arith.addf %36, %39 : vector<24x32xf32>
    %41 = arith.extf %6 : vector<24x16xbf16> to vector<24x16xf32>
    %cst_33 = arith.constant dense<0.000000e+00> : vector<16x32xf32>
    %42 = tpu.matmul %41, %40, %cst_33 {dimension_numbers = #tpu.dot_dimension_numbers<[0], [0], [1], [1], [0, 1, 1, 1], [], []>} : vector<24x16xf32>, vector<24x32xf32>, vector<16x32xf32> -> vector<16x32xf32>
    %c0_34 = arith.constant 0 : index
    %c0_35 = arith.constant 0 : index
    %c0_36 = arith.constant 0 : index
    %43 = vector.load %arg16[%c0_34, %c0_35, %c0_36] : memref<1x32x32xbf16, #tpu.memory_space<vmem>>, vector<1x32x32xbf16>
    %44 = vector.shape_cast %43 : vector<1x32x32xbf16> to vector<32x32xbf16>
    %c0_37 = arith.constant 0 : index
    %c0_38 = arith.constant 0 : index
    %c0_39 = arith.constant 0 : index
    %45 = vector.load %arg15[%c0_37, %c0_38, %c0_39] : memref<1x32x32xbf16, #tpu.memory_space<vmem>>, vector<1x32x32xbf16>
    %46 = vector.shape_cast %45 : vector<1x32x32xbf16> to vector<32x32xbf16>
    %cst_40 = arith.constant dense<0.000000e+00> : vector<16x32xf32>
    %47 = tpu.matmul %4, %46, %cst_40 {dimension_numbers = #tpu.dot_dimension_numbers<[1], [0], [0], [1], [0, 0, 1, 1], [], []>} : vector<16x32xbf16>, vector<32x32xbf16>, vector<16x32xf32> -> vector<16x32xf32>
    %48 = arith.truncf %42 : vector<16x32xf32> to vector<16x32xbf16>
    %cst_41 = arith.constant dense<0.000000e+00> : vector<16x32xf32>
    %49 = tpu.matmul %48, %44, %cst_41 {dimension_numbers = #tpu.dot_dimension_numbers<[1], [0], [0], [1], [0, 0, 1, 1], [], []>} : vector<16x32xbf16>, vector<32x32xbf16>, vector<16x32xf32> -> vector<16x32xf32>
    %50 = arith.addf %47, %49 : vector<16x32xf32>
    %c0_42 = arith.constant 0 : index
    %c0_43 = arith.constant 0 : index
    %c0_44 = arith.constant 0 : index
    %51 = vector.load %arg17[%c0_42, %c0_43, %c0_44] : memref<1x1x32xf32, #tpu.memory_space<vmem>>, vector<1x1x32xf32>
    %52 = vector.shape_cast %51 : vector<1x1x32xf32> to vector<1x32xf32>
    %53 = vector.broadcast %52 : vector<1x32xf32> to vector<16x32xf32>
    %54 = arith.addf %50, %53 : vector<16x32xf32>
    %cst_45 = arith.constant 0.000000e+00 : f32
    %55 = vector.broadcast %cst_45 : f32 to vector<16x32xf32>
    %56 = arith.cmpf ogt, %54, %55 : vector<16x32xf32>
    %cst_46 = arith.constant 0.00999999977 : f32
    %57 = vector.broadcast %cst_46 : f32 to vector<16x32xf32>
    %58 = arith.mulf %57, %54 : vector<16x32xf32>
    %59 = arith.select %56, %54, %58 : vector<16x32xi1>, vector<16x32xf32>
    %60 = arith.truncf %59 : vector<16x32xf32> to vector<16x32xbf16>
    %c0_47 = arith.constant 0 : index
    %c0_48 = arith.constant 0 : index
    %c0_49 = arith.constant 0 : index
    %61 = vector.load %arg18[%c0_47, %c0_48, %c0_49] : memref<1x32x32xbf16, #tpu.memory_space<vmem>>, vector<1x32x32xbf16>
    %62 = vector.shape_cast %61 : vector<1x32x32xbf16> to vector<32x32xbf16>
    %cst_50 = arith.constant dense<0.000000e+00> : vector<16x32xf32>
    %63 = tpu.matmul %60, %62, %cst_50 {dimension_numbers = #tpu.dot_dimension_numbers<[1], [0], [0], [1], [0, 0, 1, 1], [], []>} : vector<16x32xbf16>, vector<32x32xbf16>, vector<16x32xf32> -> vector<16x32xf32>
    %c0_51 = arith.constant 0 : index
    %c0_52 = arith.constant 0 : index
    %c0_53 = arith.constant 0 : index
    %64 = vector.load %arg19[%c0_51, %c0_52, %c0_53] : memref<1x1x32xf32, #tpu.memory_space<vmem>>, vector<1x1x32xf32>
    %65 = vector.shape_cast %64 : vector<1x1x32xf32> to vector<1x32xf32>
    %66 = vector.broadcast %65 : vector<1x32xf32> to vector<16x32xf32>
    %67 = arith.addf %63, %66 : vector<16x32xf32>
    %cst_54 = arith.constant 0.000000e+00 : f32
    %68 = vector.broadcast %cst_54 : f32 to vector<16x32xf32>
    %69 = arith.cmpf ogt, %67, %68 : vector<16x32xf32>
    %cst_55 = arith.constant 0.00999999977 : f32
    %70 = vector.broadcast %cst_55 : f32 to vector<16x32xf32>
    %71 = arith.mulf %70, %67 : vector<16x32xf32>
    %72 = arith.select %69, %67, %71 : vector<16x32xi1>, vector<16x32xf32>
    %c0_56 = arith.constant 0 : index
    %c0_57 = arith.constant 0 : index
    %73 = vector.load %arg29[%c0_56, %c0_57] : memref<16x32xf32, #tpu.memory_space<vmem>>, vector<16x32xf32>
    tpu.vector_store %arg29[%c0_56, %c0_57], %72 {strides = array<i32>} : memref<16x32xf32, #tpu.memory_space<vmem>>, vector<16x32xf32>,
    %c4_i32 = arith.constant 4 : i32
    %74 = arith.cmpi eq, %arg0, %c4_i32 : i32
    %75 = arith.extui %74 : i1 to i32
    %c0_i32_58 = arith.constant 0 : i32
    %76 = arith.cmpi ne, %75, %c0_i32_58 : i32
    scf.if %76 {
      %c0_59 = arith.constant 0 : index
      %c0_60 = arith.constant 0 : index
      %77 = vector.load %arg29[%c0_59, %c0_60] : memref<16x32xf32, #tpu.memory_space<vmem>>, vector<16x32xf32>
      %78 = arith.truncf %77 : vector<16x32xf32> to vector<16x32xbf16>
      %c0_61 = arith.constant 0 : index
      %c0_62 = arith.constant 0 : index
      %79 = vector.load %arg20[%c0_61, %c0_62] : memref<32x32xbf16, #tpu.memory_space<vmem>>, vector<32x32xbf16>
      %cst_63 = arith.constant dense<0.000000e+00> : vector<16x32xf32>
      %80 = tpu.matmul %78, %79, %cst_63 {dimension_numbers = #tpu.dot_dimension_numbers<[1], [0], [0], [1], [0, 0, 1, 1], [], []>} : vector<16x32xbf16>, vector<32x32xbf16>, vector<16x32xf32> -> vector<16x32xf32>
      %c0_64 = arith.constant 0 : index
      %c0_65 = arith.constant 0 : index
      %81 = vector.load %arg21[%c0_64, %c0_65] : memref<1x32xf32, #tpu.memory_space<vmem>>, vector<1x32xf32>
      %82 = vector.broadcast %81 : vector<1x32xf32> to vector<16x32xf32>
      %83 = arith.addf %80, %82 : vector<16x32xf32>
      %cst_66 = arith.constant 0.000000e+00 : f32
      %84 = vector.broadcast %cst_66 : f32 to vector<16x32xf32>
      %85 = arith.cmpf ogt, %83, %84 : vector<16x32xf32>
      %cst_67 = arith.constant 0.00999999977 : f32
      %86 = vector.broadcast %cst_67 : f32 to vector<16x32xf32>
      %87 = arith.mulf %86, %83 : vector<16x32xf32>
      %88 = arith.select %85, %83, %87 : vector<16x32xi1>, vector<16x32xf32>
      %89 = arith.truncf %88 : vector<16x32xf32> to vector<16x32xbf16>
      %c0_68 = arith.constant 0 : index
      %c0_69 = arith.constant 0 : index
      %90 = vector.load %arg22[%c0_68, %c0_69] : memref<32x6xbf16, #tpu.memory_space<vmem>>, vector<32x6xbf16>
      %cst_70 = arith.constant dense<0.000000e+00> : vector<16x6xf32>
      %91 = tpu.matmul %89, %90, %cst_70 {dimension_numbers = #tpu.dot_dimension_numbers<[1], [0], [0], [1], [0, 0, 1, 1], [], []>} : vector<16x32xbf16>, vector<32x6xbf16>, vector<16x6xf32> -> vector<16x6xf32>
      %c0_71 = arith.constant 0 : index
      %c0_72 = arith.constant 0 : index
      %92 = vector.load %arg23[%c0_71, %c0_72] : memref<1x6xf32, #tpu.memory_space<vmem>>, vector<1x6xf32>
      %93 = vector.broadcast %92 : vector<1x6xf32> to vector<16x6xf32>
      %94 = arith.addf %91, %93 : vector<16x6xf32>
      %c0_73 = arith.constant 0 : index
      %c0_74 = arith.constant 0 : index
      %95 = vector.load %arg24[%c0_73, %c0_74] : memref<32x16xbf16, #tpu.memory_space<vmem>>, vector<32x16xbf16>
      %cst_75 = arith.constant dense<0.000000e+00> : vector<16x16xf32>
      %96 = tpu.matmul %78, %95, %cst_75 {dimension_numbers = #tpu.dot_dimension_numbers<[1], [0], [0], [1], [0, 0, 1, 1], [], []>} : vector<16x32xbf16>, vector<32x16xbf16>, vector<16x16xf32> -> vector<16x16xf32>
      %c0_76 = arith.constant 0 : index
      %c0_77 = arith.constant 0 : index
      %97 = vector.load %arg25[%c0_76, %c0_77] : memref<1x16xf32, #tpu.memory_space<vmem>>, vector<1x16xf32>
      %98 = vector.broadcast %97 : vector<1x16xf32> to vector<16x16xf32>
      %99 = arith.addf %96, %98 : vector<16x16xf32>
      %cst_78 = arith.constant 0.000000e+00 : f32
      %100 = vector.broadcast %cst_78 : f32 to vector<16x16xf32>
      %101 = arith.cmpf ogt, %99, %100 : vector<16x16xf32>
      %cst_79 = arith.constant 0.00999999977 : f32
      %102 = vector.broadcast %cst_79 : f32 to vector<16x16xf32>
      %103 = arith.mulf %102, %99 : vector<16x16xf32>
      %104 = arith.select %101, %99, %103 : vector<16x16xi1>, vector<16x16xf32>
      %105 = arith.truncf %104 : vector<16x16xf32> to vector<16x16xbf16>
      %c0_80 = arith.constant 0 : index
      %c0_81 = arith.constant 0 : index
      %106 = vector.load %arg26[%c0_80, %c0_81] : memref<16x6xbf16, #tpu.memory_space<vmem>>, vector<16x6xbf16>
      %cst_82 = arith.constant dense<0.000000e+00> : vector<16x6xf32>
      %107 = tpu.matmul %105, %106, %cst_82 {dimension_numbers = #tpu.dot_dimension_numbers<[1], [0], [0], [1], [0, 0, 1, 1], [], []>} : vector<16x16xbf16>, vector<16x6xbf16>, vector<16x6xf32> -> vector<16x6xf32>
      %c0_83 = arith.constant 0 : index
      %c0_84 = arith.constant 0 : index
      %108 = vector.load %arg27[%c0_83, %c0_84] : memref<1x6xf32, #tpu.memory_space<vmem>>, vector<1x6xf32>
      %109 = vector.broadcast %108 : vector<1x6xf32> to vector<16x6xf32>
      %110 = arith.addf %107, %109 : vector<16x6xf32>
      %c0_85 = arith.constant 0 : index
      %c0_86 = arith.constant 0 : index
      %111 = vector.load %arg1[%c0_85, %c0_86] : memref<16x9xf32, #tpu.memory_space<vmem>>, vector<16x9xf32>
      %112 = vector.extract_strided_slice %111 {offsets = [0, 6], sizes = [16, 1], strides = [1, 1]} : vector<16x9xf32> to vector<16x1xf32>
      %cst_87 = arith.constant 1.000000e+00 : f32
      %113 = vector.broadcast %cst_87 : f32 to vector<16x1xf32>
      %114 = arith.cmpf oeq, %112, %113 : vector<16x1xf32>
      %115 = arith.extui %114 : vector<16x1xi1> to vector<16x1xi32>
      %116 = arith.sitofp %115 : vector<16x1xi32> to vector<16x1xf32>
      %117 = vector.extract_strided_slice %111 {offsets = [0, 7], sizes = [16, 1], strides = [1, 1]} : vector<16x9xf32> to vector<16x1xf32>
      %cst_88 = arith.constant 1.000000e+00 : f32
      %118 = vector.broadcast %cst_88 : f32 to vector<16x1xf32>
      %119 = arith.cmpf oeq, %117, %118 : vector<16x1xf32>
      %120 = arith.extui %119 : vector<16x1xi1> to vector<16x1xi32>
      %121 = arith.sitofp %120 : vector<16x1xi32> to vector<16x1xf32>
      %122 = vector.extract_strided_slice %111 {offsets = [0, 8], sizes = [16, 1], strides = [1, 1]} : vector<16x9xf32> to vector<16x1xf32>
      %cst_89 = arith.constant 1.000000e+00 : f32
      %123 = vector.broadcast %cst_89 : f32 to vector<16x1xf32>
      %124 = arith.cmpf oeq, %122, %123 : vector<16x1xf32>
      %125 = arith.extui %124 : vector<16x1xi1> to vector<16x1xi32>
      %126 = arith.sitofp %125 : vector<16x1xi32> to vector<16x1xf32>
      %127 = tpu.iota {dimensions = array<i32: 1>} : vector<16x6xi32>
      %c2_i32 = arith.constant 2 : i32
      %128 = vector.broadcast %c2_i32 : i32 to vector<16x6xi32>
      %129 = arith.cmpi eq, %127, %128 : vector<16x6xi32>
      %130 = arith.extui %129 : vector<16x6xi1> to vector<16x6xi32>
      %131 = arith.sitofp %130 : vector<16x6xi32> to vector<16x6xf32>
      %c3_i32 = arith.constant 3 : i32
      %132 = vector.broadcast %c3_i32 : i32 to vector<16x6xi32>
      %133 = arith.cmpi eq, %127, %132 : vector<16x6xi32>
      %134 = arith.extui %133 : vector<16x6xi1> to vector<16x6xi32>
      %135 = arith.sitofp %134 : vector<16x6xi32> to vector<16x6xf32>
      %c5_i32 = arith.constant 5 : i32
      %136 = vector.broadcast %c5_i32 : i32 to vector<16x6xi32>
      %137 = arith.cmpi eq, %127, %136 : vector<16x6xi32>
      %138 = arith.extui %137 : vector<16x6xi1> to vector<16x6xi32>
      %139 = arith.sitofp %138 : vector<16x6xi32> to vector<16x6xf32>
      %c4_i32_90 = arith.constant 4 : i32
      %140 = vector.broadcast %c4_i32_90 : i32 to vector<16x6xi32>
      %141 = arith.cmpi eq, %127, %140 : vector<16x6xi32>
      %142 = arith.extui %141 : vector<16x6xi1> to vector<16x6xi32>
      %143 = arith.sitofp %142 : vector<16x6xi32> to vector<16x6xf32>
      %144 = arith.maximumf %121, %126 : vector<16x1xf32>
      %145 = vector.broadcast %144 : vector<16x1xf32> to vector<16x6xf32>
      %146 = arith.mulf %131, %145 : vector<16x6xf32>
      %cst_91 = arith.constant 1.000000e+00 : f32
      %147 = vector.broadcast %cst_91 : f32 to vector<16x6xf32>
      %148 = arith.subf %147, %146 : vector<16x6xf32>
      %149 = arith.mulf %110, %148 : vector<16x6xf32>
      %150 = vector.broadcast %126 : vector<16x1xf32> to vector<16x6xf32>
      %151 = arith.mulf %135, %150 : vector<16x6xf32>
      %cst_92 = arith.constant 1.000000e+00 : f32
      %152 = vector.broadcast %cst_92 : f32 to vector<16x6xf32>
      %153 = arith.subf %152, %151 : vector<16x6xf32>
      %154 = arith.mulf %149, %153 : vector<16x6xf32>
      %155 = arith.subf %94, %154 : vector<16x6xf32>
      %156 = arith.subf %155, %154 : vector<16x6xf32>
      %157 = arith.subf %156, %154 : vector<16x6xf32>
      %158 = arith.extf %5 : vector<24x16xbf16> to vector<24x16xf32>
      %159 = vector.extract_strided_slice %157 {offsets = [0, 2], sizes = [16, 2], strides = [1, 1]} : vector<16x6xf32> to vector<16x2xf32>
      %cst_93 = arith.constant dense<0.000000e+00> : vector<24x2xf32>
      %160 = tpu.matmul %158, %159, %cst_93 {dimension_numbers = #tpu.dot_dimension_numbers<[1], [0], [0], [1], [0, 0, 1, 1], [], []>} : vector<24x16xf32>, vector<16x2xf32>, vector<24x2xf32> -> vector<24x2xf32>
      %cst_94 = arith.constant dense<0.000000e+00> : vector<24x2xf32>
      %161 = tpu.matmul %41, %159, %cst_94 {dimension_numbers = #tpu.dot_dimension_numbers<[1], [0], [0], [1], [0, 0, 1, 1], [], []>} : vector<24x16xf32>, vector<16x2xf32>, vector<24x2xf32> -> vector<24x2xf32>
      %162 = vector.extract_strided_slice %160 {offsets = [0, 1], sizes = [24, 1], strides = [1, 1]} : vector<24x2xf32> to vector<24x1xf32>
      %163 = vector.extract_strided_slice %161 {offsets = [0, 1], sizes = [24, 1], strides = [1, 1]} : vector<24x2xf32> to vector<24x1xf32>
      %164 = arith.subf %162, %163 : vector<24x1xf32>
      %165 = math.cos %164 : vector<24x1xf32>
      %166 = math.sin %164 : vector<24x1xf32>
      %167 = vector.extract_strided_slice %160 {offsets = [0, 0], sizes = [24, 1], strides = [1, 1]} : vector<24x2xf32> to vector<24x1xf32>
      %168 = vector.extract_strided_slice %161 {offsets = [0, 0], sizes = [24, 1], strides = [1, 1]} : vector<24x2xf32> to vector<24x1xf32>
      %169 = arith.mulf %167, %168 : vector<24x1xf32>
      %c0_95 = arith.constant 0 : index
      %c0_96 = arith.constant 0 : index
      %170 = vector.load %arg2[%c0_95, %c0_96] : memref<24x2xf32, #tpu.memory_space<vmem>>, vector<24x2xf32>
      %171 = vector.extract_strided_slice %170 {offsets = [0, 0], sizes = [24, 1], strides = [1, 1]} : vector<24x2xf32> to vector<24x1xf32>
      %172 = vector.extract_strided_slice %170 {offsets = [0, 1], sizes = [24, 1], strides = [1, 1]} : vector<24x2xf32> to vector<24x1xf32>
      %173 = arith.mulf %171, %165 : vector<24x1xf32>
      %174 = arith.mulf %172, %166 : vector<24x1xf32>
      %175 = arith.addf %173, %174 : vector<24x1xf32>
      %176 = arith.mulf %169, %175 : vector<24x1xf32>
      %177 = arith.mulf %171, %166 : vector<24x1xf32>
      %178 = arith.mulf %172, %165 : vector<24x1xf32>
      %179 = arith.subf %177, %178 : vector<24x1xf32>
      %180 = arith.mulf %169, %179 : vector<24x1xf32>
      %cst_97 = arith.constant dense<0.000000e+00> : vector<16x1xf32>
      %181 = tpu.matmul %158, %176, %cst_97 {dimension_numbers = #tpu.dot_dimension_numbers<[0], [0], [1], [1], [0, 1, 1, 1], [], []>} : vector<24x16xf32>, vector<24x1xf32>, vector<16x1xf32> -> vector<16x1xf32>
      %cst_98 = arith.constant dense<0.000000e+00> : vector<16x1xf32>
      %182 = tpu.matmul %158, %180, %cst_98 {dimension_numbers = #tpu.dot_dimension_numbers<[0], [0], [1], [1], [0, 1, 1, 1], [], []>} : vector<24x16xf32>, vector<24x1xf32>, vector<16x1xf32> -> vector<16x1xf32>
      %183 = vector.extract_strided_slice %157 {offsets = [0, 4], sizes = [16, 1], strides = [1, 1]} : vector<16x6xf32> to vector<16x1xf32>
      %184 = vector.extract_strided_slice %157 {offsets = [0, 0], sizes = [16, 1], strides = [1, 1]} : vector<16x6xf32> to vector<16x1xf32>
      %185 = arith.subf %183, %184 : vector<16x1xf32>
      %186 = arith.subf %185, %181 : vector<16x1xf32>
      %187 = vector.extract_strided_slice %157 {offsets = [0, 5], sizes = [16, 1], strides = [1, 1]} : vector<16x6xf32> to vector<16x1xf32>
      %188 = vector.extract_strided_slice %157 {offsets = [0, 1], sizes = [16, 1], strides = [1, 1]} : vector<16x6xf32> to vector<16x1xf32>
      %189 = arith.subf %187, %188 : vector<16x1xf32>
      %190 = arith.subf %189, %182 : vector<16x1xf32>
      %191 = arith.mulf %116, %190 : vector<16x1xf32>
      %192 = vector.broadcast %191 : vector<16x1xf32> to vector<16x6xf32>
      %193 = arith.mulf %131, %192 : vector<16x6xf32>
      %194 = arith.mulf %121, %190 : vector<16x1xf32>
      %195 = vector.broadcast %194 : vector<16x1xf32> to vector<16x6xf32>
      %196 = arith.mulf %139, %195 : vector<16x6xf32>
      %197 = arith.addf %193, %196 : vector<16x6xf32>
      %198 = vector.broadcast %186 : vector<16x1xf32> to vector<16x6xf32>
      %199 = arith.mulf %143, %198 : vector<16x6xf32>
      %200 = arith.addf %197, %199 : vector<16x6xf32>
      %cst_99 = arith.constant 5.000000e-02 : f32
      %201 = vector.broadcast %cst_99 : f32 to vector<16x6xf32>
      %202 = arith.mulf %200, %201 : vector<16x6xf32>
      %203 = arith.addf %157, %202 : vector<16x6xf32>
      %c0_100 = arith.constant 0 : index
      %c0_101 = arith.constant 0 : index
      %204 = vector.load %arg28[%c0_100, %c0_101] : memref<16x6xf32, #tpu.memory_space<vmem>>, vector<16x6xf32>
      tpu.vector_store %arg28[%c0_100, %c0_101], %203 {strides = array<i32>} : memref<16x6xf32, #tpu.memory_space<vmem>>, vector<16x6xf32>,
    } else {
    }
    return
  }
  func.func @transform_0(%arg0: i32) -> (i32, i32) {
    %c0_i32 = arith.constant 0 : i32
    %c0_i32_0 = arith.constant 0 : i32
    %c0_i32_1 = arith.constant 0 : i32
    return %c0_i32, %c0_i32_0 : i32, i32
  }
  func.func @transform_1(%arg0: i32) -> (i32, i32) {
    %c0_i32 = arith.constant 0 : i32
    %c0_i32_0 = arith.constant 0 : i32
    %c0_i32_1 = arith.constant 0 : i32
    return %c0_i32, %c0_i32_0 : i32, i32
  }
  func.func @transform_2(%arg0: i32) -> (i32, i32) {
    %c0_i32 = arith.constant 0 : i32
    %c0_i32_0 = arith.constant 0 : i32
    %c0_i32_1 = arith.constant 0 : i32
    return %c0_i32, %c0_i32_0 : i32, i32
  }
  func.func @transform_3(%arg0: i32) -> (i32, i32) {
    %c0_i32 = arith.constant 0 : i32
    %c0_i32_0 = arith.constant 0 : i32
    %c0_i32_1 = arith.constant 0 : i32
    return %c0_i32, %c0_i32_0 : i32, i32
  }
  func.func @transform_4(%arg0: i32) -> (i32, i32) {
    %c0_i32 = arith.constant 0 : i32
    %c0_i32_0 = arith.constant 0 : i32
    %c0_i32_1 = arith.constant 0 : i32
    return %c0_i32, %c0_i32_0 : i32, i32
  }
  func.func @transform_5(%arg0: i32) -> (i32, i32) {
    %c0_i32 = arith.constant 0 : i32
    %c0_i32_0 = arith.constant 0 : i32
    %c0_i32_1 = arith.constant 0 : i32
    return %c0_i32, %c0_i32_0 : i32, i32
  }
  func.func @transform_6(%arg0: i32) -> (i32, i32) {
    %c0_i32 = arith.constant 0 : i32
    %c0_i32_0 = arith.constant 0 : i32
    %c0_i32_1 = arith.constant 0 : i32
    return %c0_i32, %c0_i32_0 : i32, i32
  }
  func.func @transform_7(%arg0: i32) -> (i32, i32) {
    %c0_i32 = arith.constant 0 : i32
    %c0_i32_0 = arith.constant 0 : i32
    %c0_i32_1 = arith.constant 0 : i32
    return %c0_i32, %c0_i32_0 : i32, i32
  }
  func.func @transform_8(%arg0: i32) -> (i32, i32, i32) {
    %c0_i32 = arith.constant 0 : i32
    %c0_i32_0 = arith.constant 0 : i32
    %c0_i32_1 = arith.constant 0 : i32
    return %arg0, %c0_i32, %c0_i32_0 : i32, i32, i32
  }
  func.func @transform_9(%arg0: i32) -> (i32, i32, i32) {
    %c0_i32 = arith.constant 0 : i32
    %c0_i32_0 = arith.constant 0 : i32
    %c0_i32_1 = arith.constant 0 : i32
    return %arg0, %c0_i32, %c0_i32_0 : i32, i32, i32
  }
  func.func @transform_10(%arg0: i32) -> (i32, i32, i32) {
    %c0_i32 = arith.constant 0 : i32
    %c0_i32_0 = arith.constant 0 : i32
    %c0_i32_1 = arith.constant 0 : i32
    return %arg0, %c0_i32, %c0_i32_0 : i32, i32, i32
  }
  func.func @transform_11(%arg0: i32) -> (i32, i32, i32) {
    %c0_i32 = arith.constant 0 : i32
    %c0_i32_0 = arith.constant 0 : i32
    %c0_i32_1 = arith.constant 0 : i32
    return %arg0, %c0_i32, %c0_i32_0 : i32, i32, i32
  }
  func.func @transform_12(%arg0: i32) -> (i32, i32, i32) {
    %c0_i32 = arith.constant 0 : i32
    %c0_i32_0 = arith.constant 0 : i32
    %c0_i32_1 = arith.constant 0 : i32
    return %arg0, %c0_i32, %c0_i32_0 : i32, i32, i32
  }
  func.func @transform_13(%arg0: i32) -> (i32, i32, i32) {
    %c0_i32 = arith.constant 0 : i32
    %c0_i32_0 = arith.constant 0 : i32
    %c0_i32_1 = arith.constant 0 : i32
    return %arg0, %c0_i32, %c0_i32_0 : i32, i32, i32
  }
  func.func @transform_14(%arg0: i32) -> (i32, i32, i32) {
    %c0_i32 = arith.constant 0 : i32
    %c0_i32_0 = arith.constant 0 : i32
    %c0_i32_1 = arith.constant 0 : i32
    return %arg0, %c0_i32, %c0_i32_0 : i32, i32, i32
  }
  func.func @transform_15(%arg0: i32) -> (i32, i32, i32) {
    %c0_i32 = arith.constant 0 : i32
    %c0_i32_0 = arith.constant 0 : i32
    %c0_i32_1 = arith.constant 0 : i32
    return %arg0, %c0_i32, %c0_i32_0 : i32, i32, i32
  }
  func.func @transform_16(%arg0: i32) -> (i32, i32, i32) {
    %c0_i32 = arith.constant 0 : i32
    %c0_i32_0 = arith.constant 0 : i32
    %c0_i32_1 = arith.constant 0 : i32
    return %arg0, %c0_i32, %c0_i32_0 : i32, i32, i32
  }
  func.func @transform_17(%arg0: i32) -> (i32, i32, i32) {
    %c0_i32 = arith.constant 0 : i32
    %c0_i32_0 = arith.constant 0 : i32
    %c0_i32_1 = arith.constant 0 : i32
    return %arg0, %c0_i32, %c0_i32_0 : i32, i32, i32
  }
  func.func @transform_18(%arg0: i32) -> (i32, i32, i32) {
    %c0_i32 = arith.constant 0 : i32
    %c0_i32_0 = arith.constant 0 : i32
    %c0_i32_1 = arith.constant 0 : i32
    return %arg0, %c0_i32, %c0_i32_0 : i32, i32, i32
  }
  func.func @transform_19(%arg0: i32) -> (i32, i32) {
    %c0_i32 = arith.constant 0 : i32
    %c0_i32_0 = arith.constant 0 : i32
    %c0_i32_1 = arith.constant 0 : i32
    return %c0_i32, %c0_i32_0 : i32, i32
  }
  func.func @transform_20(%arg0: i32) -> (i32, i32) {
    %c0_i32 = arith.constant 0 : i32
    %c0_i32_0 = arith.constant 0 : i32
    %c0_i32_1 = arith.constant 0 : i32
    return %c0_i32, %c0_i32_0 : i32, i32
  }
  func.func @transform_21(%arg0: i32) -> (i32, i32) {
    %c0_i32 = arith.constant 0 : i32
    %c0_i32_0 = arith.constant 0 : i32
    %c0_i32_1 = arith.constant 0 : i32
    return %c0_i32, %c0_i32_0 : i32, i32
  }
  func.func @transform_22(%arg0: i32) -> (i32, i32) {
    %c0_i32 = arith.constant 0 : i32
    %c0_i32_0 = arith.constant 0 : i32
    %c0_i32_1 = arith.constant 0 : i32
    return %c0_i32, %c0_i32_0 : i32, i32
  }
  func.func @transform_23(%arg0: i32) -> (i32, i32) {
    %c0_i32 = arith.constant 0 : i32
    %c0_i32_0 = arith.constant 0 : i32
    %c0_i32_1 = arith.constant 0 : i32
    return %c0_i32, %c0_i32_0 : i32, i32
  }
  func.func @transform_24(%arg0: i32) -> (i32, i32) {
    %c0_i32 = arith.constant 0 : i32
    %c0_i32_0 = arith.constant 0 : i32
    %c0_i32_1 = arith.constant 0 : i32
    return %c0_i32, %c0_i32_0 : i32, i32
  }
  func.func @transform_25(%arg0: i32) -> (i32, i32) {
    %c0_i32 = arith.constant 0 : i32
    %c0_i32_0 = arith.constant 0 : i32
    %c0_i32_1 = arith.constant 0 : i32
    return %c0_i32, %c0_i32_0 : i32, i32
  }
  func.func @transform_26(%arg0: i32) -> (i32, i32) {
    %c0_i32 = arith.constant 0 : i32
    %c0_i32_0 = arith.constant 0 : i32
    %c0_i32_1 = arith.constant 0 : i32
    return %c0_i32, %c0_i32_0 : i32, i32
  }
  func.func @transform_27(%arg0: i32) -> (i32, i32) {
    %c0_i32 = arith.constant 0 : i32
    %c0_i32_0 = arith.constant 0 : i32
    %c0_i32_1 = arith.constant 0 : i32
    return %c0_i32, %c0_i32_0 : i32, i32
  }
}

</mosaic_0001>

<bundles_post_ra>
// kernel: forward.1
= control target key start
LH: loop header
LB: loop body
LE: loop exit
PB: predicated region body
PF: predicated region fallthrough
CT: control target
= control target key end

     0   :  { %s5020_s0 = inlined_call_operand.vmem [shape: f32[16,9], index: 0, kind: input, shape index: {}]   ;;  %s5021_s1 = inlined_call_operand.vmem [shape: f32[24,2], index: 1, kind: input, shape index: {}]   ;;  %s5022_s2 = inlined_call_operand.vmem [shape: bf16[24,16], index: 2, kind: input, shape index: {}]   ;;  %s5023_s3 = inlined_call_operand.vmem [shape: bf16[24,16], index: 3, kind: input, shape index: {}]   ;;  %s5024_s4 = inlined_call_operand.vmem [shape: bf16[9,32], index: 4, kind: input, shape index: {}]   ;;  %s5025_s5 = inlined_call_operand.vmem [shape: f32[1,32], index: 5, kind: input, shape index: {}]   ;;  %s5026_s6 = inlined_call_operand.vmem [shape: bf16[32,32], index: 6, kind: input, shape index: {}]   ;;  %s5027_s7 = inlined_call_operand.vmem [shape: f32[1,32], index: 7, kind: input, shape index: {}]   ;;  %s5028_s8 = inlined_call_operand.hbm [shape: bf16[5,32,32], index: 8, kind: input, shape index: {}]   ;;  %s5029_s9 = inlined_call_operand.hbm [shape: bf16[5,32,32], index: 9, kind: input, shape index: {}]   ;;  %s5030_s10 = inlined_call_operand.vmem [shape: bf16[5,2,32], index: 10, kind: input, shape index: {}]   ;;  %s5031_s11 = inlined_call_operand.vmem [shape: f32[5,1,32], index: 11, kind: input, shape index: {}]   ;;  %s5032_s12 = inlined_call_operand.hbm [shape: bf16[5,32,32], index: 12, kind: input, shape index: {}]   ;;  %s5033_s13 = inlined_call_operand.vmem [shape: f32[5,1,32], index: 13, kind: input, shape index: {}]   ;;  %s5034_s14 = inlined_call_operand.hbm [shape: bf16[5,32,32], index: 14, kind: input, shape index: {}]   ;;  %s5035_s15 = inlined_call_operand.hbm [shape: bf16[5,32,32], index: 15, kind: input, shape index: {}]   ;;  %s5036_s16 = inlined_call_operand.vmem [shape: f32[5,1,32], index: 16, kind: input, shape index: {}]   ;;  %s5037_s17 = inlined_call_operand.hbm [shape: bf16[5,32,32], index: 17, kind: input, shape index: {}]   ;;  %s5038_s18 = inlined_call_operand.vmem [shape: f32[5,1,32], index: 18, kind: input, shape index: {}]   ;;  %s5039_s19 = inlined_call_operand.vmem [shape: bf16[32,32], index: 19, kind: input, shape index: {}]   ;;  %s5040_s20 = inlined_call_operand.vmem [shape: f32[1,32], index: 20, kind: input, shape index: {}]   ;;  %s5041_s21 = inlined_call_operand.vmem [shape: bf16[32,6], index: 21, kind: input, shape index: {}]   ;;  %s5042_s22 = inlined_call_operand.vmem [shape: f32[1,6], index: 22, kind: input, shape index: {}]   ;;  %s5043_s23 = inlined_call_operand.vmem [shape: bf16[32,16], index: 23, kind: input, shape index: {}]   ;;  %s5044_s24 = inlined_call_operand.vmem [shape: f32[1,16], index: 24, kind: input, shape index: {}]   ;;  %s5045_s25 = inlined_call_operand.vmem [shape: bf16[16,6], index: 25, kind: input, shape index: {}]   ;;  %s5046_s26 = inlined_call_operand.vmem [shape: f32[1,6], index: 26, kind: input, shape index: {}]   ;;  %s5047_s27 = inlined_call_operand.vmem [shape: f32[16,6], index: 27, kind: output, shape index: {}]  }
   0x1   :  { %5082 = sst [smem:[#allocation21_spill]] %s5020_s0 }
   0x2   :  { %5083 = sst [smem:[#allocation22_spill]] %s5021_s1 }
   0x3   :  { %5084 = sst [smem:[#allocation23_spill]] %s5022_s2 }
   0x4   :  { %5085 = sst [smem:[#allocation24_spill]] %s5023_s3 }
   0x5   :  { %5086 = sst [smem:[#allocation25_spill]] %s5024_s4 }
   0x6   :  { %5087 = sst [smem:[#allocation26_spill]] %s5025_s5 }
   0x7   :  { %5088 = sst [smem:[#allocation27_spill]] %s5026_s6 }
   0x8   :  { %5089 = sst [smem:[#allocation28_spill]] %s5027_s7 }
   0x9   :  { %5090 = sst [smem:[#allocation29_spill]] %s5028_s8 }
   0xa   :  { %5091 = sst [smem:[#allocation30_spill]] %s5029_s9 }
   0xb   :  { %5092 = sst [smem:[#allocation31_spill]] %s5030_s10 }
   0xc   :  { %5093 = sst [smem:[#allocation32_spill]] %s5031_s11 }
   0xd   :  { %5094 = sst [smem:[#allocation33_spill]] %s5033_s13 }
   0xe   :  { %5095 = sst [smem:[#allocation34_spill]] %s5034_s14 }
   0xf   :  { %5096 = sst [smem:[#allocation35_spill]] %s5036_s16 }
  0x10   :  { %5097 = sst [smem:[#allocation36_spill]] %s5038_s18 }
  0x11   :  { %5098 = sst [smem:[#allocation37_spill]] %s5039_s19 }
  0x12   :  { %5099 = sst [smem:[#allocation38_spill]] %s5040_s20 }
  0x13   :  { %5100 = sst [smem:[#allocation39_spill]] %s5041_s21 }
  0x14   :  { %5101 = sst [smem:[#allocation40_spill]] %s5042_s22 }
  0x15   :  { %5102 = sst [smem:[#allocation41_spill]] %s5043_s23 }
  0x16   :  { %5103 = sst [smem:[#allocation42_spill]] %s5044_s24 }
  0x17   :  { %5104 = sst [smem:[#allocation43_spill]] %s5045_s25 }
  0x18   :  { %5105 = sst [smem:[#allocation44_spill]] %s5046_s26 }
  0x19   :  { %5106 = sst [smem:[#allocation45_spill]] %s5047_s27 }
  0x1a   :  { %32 = vsyncpa [#allocation4], 0 }
  0x1b   :  { %34 = vsyncpa [#allocation4 + $0x1], 0 }
  0x1c   :  { %35 = vsyncpa [#allocation6], 0 }
  0x1d   :  { %37 = vsyncpa [#allocation6 + $0x1], 0 }
  0x1e   :  { %38 = vsyncpa [#allocation9], 0 }
  0x1f   :  { %40 = vsyncpa [#allocation9 + $0x1], 0 }
  0x20   :  { %41 = vsyncpa [#allocation12], 0 }
  0x21   :  { %43 = vsyncpa [#allocation12 + $0x1], 0  ;;  %s4052_s7 = smov 0   ;;  %s4054_s4 = smov 0  }
  0x22   :  { %s4056_s8 = smov 0   ;;  %s4058_s30 = smov 0  }
  0x23 LB: > { %5107 = sst [smem:[#allocation17_spill]] %s3885_s8  ;;  %s4071_s9 = sadd.s32 4294967295, %s3889_s30   ;;  %s3889_s30 = sphi %s4058_s30, %s5176_s30   ;;  %s3885_s8 = sphi %s4056_s8, %s5178_s8   ;;  %s3881_s4 = sphi %s4054_s4, %s5180_s4   ;;  %s3877_s7 = sphi %s4052_s7, %s5179_s7  }
  0x24   : > { %s4074_s5 = sadd.s32 1, %s3889_s30   ;;  %s224_s0 = sadd.s32 1, %s3885_s8 }
  0x25   : > { %5108 = sst [smem:[#allocation18_spill]] %s4074_s5  ;;  %s221_s28 = ssub.s32 %s3889_s30, %s4074_s5 }
  0x26   : > { %p222_p0 = scmp.eq.s32.totalorder %s221_s28, 0  ;;  %p231_p1 = scmp.ne.s32.totalorder %s3885_s8, %s3881_s4 }
  0x27   : > { %p232_p2 = scmp.eq.s32.totalorder %s3889_s30, 0  ;;  %p237_p3 = scmp.ne.s32.totalorder %s3881_s4, %s3877_s7 }
  0x28   : > { %s4084_s10 = scalar_select %p222_p0, %s3885_s8, %s224_s0  }
  0x29   : > { %p233_p4 = por %p232_p2, %p231_p1  ;;  %p238_p5 = scmp.eq.s32.totalorder %s4071_s9, 0 }
  0x2a   : > { %5109 = sst [smem:[#allocation19_spill]] %s4084_s10  ;;  %p3571_p6 = scmp.lt.s32.totalorder %s3889_s30, 5 }
  0x2b   : > { %p4088_p7 = por %p238_p5, %p237_p3  ;;  %s4093_s1 = sand.u32 1, %s3885_s8  }
  0x2c   : > { %s4096_s6 = sshll.u32 %s4093_s1, 4  ;;  %s4099_s11 = sshll.u32 %s3889_s30, 4 }
  0x2d   : > { %p4101_p8 = pnand %p3571_p6, %p233_p4  ;;  %s5062_s3 = sand.u32 1, %s3889_s30  }
  0x2e   : > { %s5112_s0 = sld [smem:[#allocation30_spill]]  ;;  %s784_s8 = scalar_lea.vmem [#allocation5], %s4096_s6 }
  0x2f   : > { %s792_s27 = sshll.u32 %s784_s8, 4  ;;  %s4113_s22 = scalar_lea.sflag [#allocation6], %s5062_s3  ;;  %s793_s27 = int_to_ptr.vmem [resolvable:$true] %s792_s27 }
  0x30   : > { %p4117_p10 = pneg %p4101_p8 }
  0x34   : > { %s789_s10 = scalar_lea.hbm %s5112_s0, %s4099_s11  ;;  %s3670_s7 = scalar_lea.hbm %s5112_s0, 80 }
  0x35   : > { %s790_s5 = sshll.u32 %s789_s10, 4  ;;  %s791_s5 = int_to_ptr.hbm [resolvable:$true] %s790_s5 }
  0x36   : > { %s3663_s26 = sshra.s32 %s791_s5, 4  ;;  %s3664_s26 = int_to_ptr.hbm [resolvable:$true] %s3663_s26 }
  0x37   : > { %s3665_s24 = scalar_lea.hbm %s3664_s26, 16  ;;  %p3671_p13 = scmp.lt.s32.totalorder %s3664_s26, %s5112_s0 }
  0x38   : > { %p3666_p9 = scmp.ne.s32.totalorder %s3664_s26, %s3665_s24  ;;  %p3672_p0 = scmp.lt.s32.totalorder %s3670_s7, %s3665_s24 }
  0x3a   : > { %p3668_p11 = pnand %p4117_p10, %p3666_p9  ;;  %p3673_p1 = por %p3672_p0, %p3671_p13 }
  0x3c   : > { %p3669_p12 = pneg %p3668_p11 }
  0x3e   : > { %p3674_p2 = pnand %p3673_p1, %p3669_p12 }
  0x40   : > { %3677 = shalt.err (!%p3674_p2)
}
  0x41   : > { %s5067_s25 = smov 64   ;;  %s3892_s21 = smov 4  }
  0x42   : > { %3558 = dma.hbm_to_vmem [thread:$0]  (!%p4101_p8), %s791_s5, 256, %s793_s27, %s4113_s22, %s5067_s25, %s5067_s25, %s3892_s21  }
  0x43   : > { %p3346_p3 = scmp.ge.s32.totalorder %s3889_s30, 1  ;;  %p918_p4 = scmp.lt.s32.totalorder %s3889_s30, 6 }
  0x44   : > { %s5115_s14 = sld [smem:[#allocation34_spill]]  ;;  %s846_s7 = scalar_lea.vmem [#allocation8], %s4096_s6 }
  0x45   : > { %p4137_p5 = pnand %p3346_p3, %p918_p4  ;;  %s854_s28 = sshll.u32 %s846_s7, 4  ;;  %s855_s28 = int_to_ptr.vmem [resolvable:$true] %s854_s28 }
  0x46   : > { %s5116_s0 = sand.u32 1, %s3889_s30  }
  0x47   : > { %s4148_s23 = scalar_lea.sflag [#allocation9], %s5116_s0 }
  0x4a   : > { %s851_s10 = scalar_lea.hbm %s5115_s14, %s4099_s11  ;;  %s3700_s26 = scalar_lea.hbm %s5115_s14, 80 }
  0x4b   : > { %s852_s8 = sshll.u32 %s851_s10, 4  ;;  %s853_s8 = int_to_ptr.hbm [resolvable:$true] %s852_s8 }
  0x4c   : > { %s3693_s19 = sshra.s32 %s853_s8, 4  ;;  %s3694_s19 = int_to_ptr.hbm [resolvable:$true] %s3693_s19 }
  0x4d   : > { %s3695_s27 = scalar_lea.hbm %s3694_s19, 16  ;;  %p3701_p12 = scmp.lt.s32.totalorder %s3694_s19, %s5115_s14 }
  0x4e   : > { %p3696_p6 = scmp.ne.s32.totalorder %s3694_s19, %s3695_s27  ;;  %p3702_p13 = scmp.lt.s32.totalorder %s3700_s26, %s3695_s27 }
  0x50   : > { %p3698_p9 = pnand %p3696_p6, %p4117_p10  ;;  %p3703_p0 = por %p3702_p13, %p3701_p12 }
  0x52   : > { %p3699_p11 = pneg %p3698_p9 }
  0x54   : > { %p3704_p1 = pnand %p3703_p0, %p3699_p11 }
  0x56   : > { %3707 = shalt.err (!%p3704_p1)
}
  0x57   : > { %s5117_s30 = smov 64   ;;  %s5118_s7 = sld [smem:[#allocation29_spill]] }
  0x58   : > { %3564 = dma.hbm_to_vmem [thread:$0]  (!%p4101_p8), %s853_s8, 256, %s855_s28, %s4148_s23, %s5117_s30, %s5117_s30, %s3892_s21  }
  0x59   : > { %s762_s19 = scalar_lea.vmem [#allocation3], %s4096_s6  ;;  %s759_s10 = scalar_lea.sflag [#allocation4], %s4093_s1 }
  0x5a   : > { %s770_s27 = sshll.u32 %s762_s19, 4  ;;  %s771_s27 = int_to_ptr.vmem [resolvable:$true] %s770_s27 }
  0x5d   : > { %s5119_s5 = smov %s5118_s7  ;;  %s767_s3 = scalar_lea.hbm %s5118_s7, %s4099_s11 }
  0x5e   : > { %s768_s26 = sshll.u32 %s767_s3, 4  ;;  %s3730_s8 = scalar_lea.hbm %s5119_s5, 80  ;;  %s769_s26 = int_to_ptr.hbm [resolvable:$true] %s768_s26 }
  0x5f   : > { %s3723_s14 = sshra.s32 %s769_s26, 4  ;;  %s3724_s14 = int_to_ptr.hbm [resolvable:$true] %s3723_s14 }
  0x60   : > { %s3725_s18 = scalar_lea.hbm %s3724_s14, 16  ;;  %p3731_p6 = scmp.lt.s32.totalorder %s3724_s14, %s5119_s5 }
  0x61   : > { %p3726_p2 = scmp.ne.s32.totalorder %s3724_s14, %s3725_s18  ;;  %p3732_p9 = scmp.lt.s32.totalorder %s3730_s8, %s3725_s18 }
  0x63   : > { %p3728_p3 = pnand %p3726_p2, %p4117_p10  ;;  %p3733_p11 = por %p3732_p9, %p3731_p6 }
  0x65   : > { %p3729_p4 = pneg %p3728_p3 }
  0x67   : > { %p3734_p12 = pnand %p3733_p11, %p3729_p4 }
  0x69   : > { %3737 = shalt.err (!%p3734_p12)
}
  0x6a   : > { %3555 = dma.hbm_to_vmem [thread:$0]  (!%p4101_p8), %s769_s26, 256, %s771_s27, %s759_s10, %s5117_s30, %s5117_s30, %s3892_s21  }
  0x6b   : > { %s823_s16 = scalar_lea.hbm %s5032_s12, %s4099_s11  ;;  %s818_s7 = scalar_lea.vmem [#allocation7], %s4096_s6 }
  0x6c   : > { %s826_s3 = sshll.u32 %s818_s7, 4  ;;  %s824_s14 = sshll.u32 %s823_s16, 4  ;;  %s827_s3 = int_to_ptr.vmem [resolvable:$true] %s826_s3  ;;  %s825_s14 = int_to_ptr.hbm [resolvable:$true] %s824_s14 }
  0x6d   : > { %s3753_s18 = sshra.s32 %s825_s14, 4  ;;  %s3760_s27 = scalar_lea.hbm %s5032_s12, 80  ;;  %s3754_s18 = int_to_ptr.hbm [resolvable:$true] %s3753_s18 }
  0x6e   : > { %s3755_s19 = scalar_lea.hbm %s3754_s18, 16  ;;  %p3761_p2 = scmp.lt.s32.totalorder %s3754_s18, %s5032_s12 }
  0x6f   : > { %p3756_p13 = scmp.ne.s32.totalorder %s3754_s18, %s3755_s19  ;;  %p3762_p3 = scmp.lt.s32.totalorder %s3760_s27, %s3755_s19 }
  0x71   : > { %p3758_p0 = pnand %p3756_p13, %p4117_p10  ;;  %p3763_p4 = por %p3762_p3, %p3761_p2 }
  0x73   : > { %p3759_p1 = pneg %p3758_p0 }
  0x75   : > { %p3764_p6 = pnand %p3763_p4, %p3759_p1 }
  0x77   : > { %3767 = shalt.err (!%p3764_p6)
}
  0x78   : > { %3561 = dma.hbm_to_vmem [thread:$0]  (!%p4101_p8), %s825_s14, 256, %s827_s3, %s4113_s22, %s5117_s30, %s5117_s30, %s3892_s21  }
  0x79   : > { %s873_s13 = scalar_lea.hbm %s5035_s15, %s4099_s11  ;;  %s868_s16 = scalar_lea.vmem [#allocation10], %s4096_s6 }
  0x7a   : > { %s876_s7 = sshll.u32 %s868_s16, 4  ;;  %s874_s18 = sshll.u32 %s873_s13, 4  ;;  %s877_s7 = int_to_ptr.vmem [resolvable:$true] %s876_s7  ;;  %s875_s18 = int_to_ptr.hbm [resolvable:$true] %s874_s18 }
  0x7b   : > { %s3783_s19 = sshra.s32 %s875_s18, 4  ;;  %s3790_s22 = scalar_lea.hbm %s5035_s15, 80  ;;  %s3784_s19 = int_to_ptr.hbm [resolvable:$true] %s3783_s19 }
  0x7c   : > { %s3785_s8 = scalar_lea.hbm %s3784_s19, 16  ;;  %p3791_p13 = scmp.lt.s32.totalorder %s3784_s19, %s5035_s15 }
  0x7d   : > { %p3786_p9 = scmp.ne.s32.totalorder %s3784_s19, %s3785_s8  ;;  %p3792_p0 = scmp.lt.s32.totalorder %s3790_s22, %s3785_s8 }
  0x7f   : > { %p3788_p11 = pnand %p3786_p9, %p4117_p10  ;;  %p3793_p1 = por %p3792_p0, %p3791_p13 }
  0x81   : > { %p3789_p12 = pneg %p3788_p11 }
  0x83   : > { %p3794_p2 = pnand %p3793_p1, %p3789_p12 }
  0x85   : > { %3797 = shalt.err (!%p3794_p2)
}
  0x86   : > { %3567 = dma.hbm_to_vmem [thread:$0]  (!%p4101_p8), %s875_s18, 256, %s877_s7, %s4148_s23, %s5117_s30, %s5117_s30, %s3892_s21  }
  0x87   : > { %s901_s25 = scalar_lea.hbm %s5037_s17, %s4099_s11  ;;  %s896_s13 = scalar_lea.vmem [#allocation11], %s4096_s6 }
  0x88   : > { %s902_s0 = sshll.u32 %s901_s25, 4  ;;  %s904_s16 = sshll.u32 %s896_s13, 4  ;;  %s903_s0 = int_to_ptr.hbm [resolvable:$true] %s902_s0  ;;  %s905_s16 = int_to_ptr.vmem [resolvable:$true] %s904_s16 }
  0x89   : > { %s893_s19 = scalar_lea.sflag [#allocation12], %s4093_s1  ;;  %s3813_s8 = sshra.s32 %s903_s0, 4  ;;  %s3814_s8 = int_to_ptr.hbm [resolvable:$true] %s3813_s8 }
  0x8a   : > { %s3815_s28 = scalar_lea.hbm %s3814_s8, 16  ;;  %s3820_s23 = scalar_lea.hbm %s5037_s17, 80 }
  0x8b   : > { %p3816_p3 = scmp.ne.s32.totalorder %s3814_s8, %s3815_s28  ;;  %p3821_p9 = scmp.lt.s32.totalorder %s3814_s8, %s5037_s17 }
  0x8c   : > { %p3822_p11 = scmp.lt.s32.totalorder %s3820_s23, %s3815_s28 }
  0x8d   : > { %p3818_p4 = pnand %p3816_p3, %p4117_p10 }
  0x8e   : > { %p3823_p12 = por %p3822_p11, %p3821_p9 }
  0x8f   : > { %p3819_p6 = pneg %p3818_p4 }
  0x91   : > { %p3824_p13 = pnand %p3823_p12, %p3819_p6 }
  0x93   : > { %3827 = shalt.err (!%p3824_p13)
}
  0x94   : > { %3570 = dma.hbm_to_vmem [thread:$0]  (!%p4101_p8), %s903_s0, 256, %s905_s16, %s893_s19, %s5117_s30, %s5117_s30, %s3892_s21  }
  0x95   : > { %922 = sbr.rel (%p4137_p5) target bundleno = 2768 (0xad0), region = 128  ;;  %s924_s20 = sand.u32 (!%p4137_p5), 1, %s3881_s4  }
  0x96   : > { %s4243_s1 = sshll.u32 (!%p4137_p5), %s924_s20, 4  ;;  %s925_s6 = scalar_lea.sflag (!%p4137_p5), [#allocation4], %s924_s20 }
  0x97   : > { %s928_s11 = scalar_lea.vmem (!%p4137_p5), [#allocation3], %s4243_s1 }
  0x9a   : > { %3860 = dma.done.wait (%p4088_p7), %s925_s6, 256  }
  0x9b   : > { %3862 = vsyncadd (%p4088_p7), %s925_s6, 4294967040  ;;  %s934_s21 = sand.u32 1, %s4071_s9   ;;  %s938_s24 = scalar_lea.vmem [#allocation5], %s4243_s1 }
  0x9c   : > { %s935_s2 = scalar_lea.sflag [#allocation6], %s934_s21 }
  0x9d   : > { %3864 = dma.done.wait (%p4088_p7), %s935_s2, 512  }
  0x9e   : > { %3866 = vsyncadd (%p4088_p7), %s935_s2, 4294966784  ;;  %s948_s30 = scalar_lea.vmem [#allocation7], %s4243_s1  ;;  %s955_s3 = scalar_lea.sflag [#allocation9], %s934_s21 }
  0x9f   : > { %3868 = dma.done.wait (%p4088_p7), %s955_s3, 512  }
  0xa0   : > { %3870 = vsyncadd (%p4088_p7), %s955_s3, 4294966784  ;;  %s975_s10 = scalar_lea.sflag [#allocation12], %s924_s20 }
  0xa1   : > { %3872 = dma.done.wait (%p4088_p7), %s975_s10, 256  }
  0xa2   : > { %3874 = vsyncadd (%p4088_p7), %s975_s10, 4294967040  ;;  %p1085_p8 = scmp.lt.s32.totalorder %s4071_s9, 4  ;;  %s5120_s19 = sld [smem:[#allocation31_spill]] }
  0xa3   : > { %s5121_s22 = sld [smem:[#allocation32_spill]]  ;;  %p3353_p7 = scmp.ne.s32.totalorder %s4071_s9, 0 }
  0xa4   : > { %s4270_s0 = scalar_select %p1085_p8, %s4071_s9, 4 }
  0xa5   : > { %s5122_s18 = sld [smem:[#allocation33_spill]] }
  0xa6   : > { %s5123_s2 = sld [smem:[#allocation35_spill]] }
  0xa7   : > { %s5124_s13 = sld [smem:[#allocation36_spill]] }
  0xa8   : > { %s1087_s8 = scalar_lea.vmem %s5120_s19, %s4270_s0  ;;  %s5125_s14 = sld [smem:[#allocation25_spill]] (!%p3353_p7) }
  0xa9   : > { %s1090_s23 = scalar_lea.vmem %s5121_s22, %s4270_s0  ;;  %1104 = sbr.rel (%p3353_p7) target bundleno = 461 (0x1cd), region = 156 }
  0xaa   : > { %s5126_s25 = sld [smem:[#allocation21_spill]] (!%p3353_p7) }
  0xab   : > { %s1093_s20 = scalar_lea.vmem %s5122_s18, %s4270_s0  ;;  %s5127_s21 = sld [smem:[#allocation27_spill]] (!%p3353_p7) }
  0xac   : > { %s1096_s3 = scalar_lea.vmem %s5123_s2, %s4270_s0  ;;  %s5128_s28 = sld [smem:[#allocation26_spill]] (!%p3353_p7) }
  0xad   : > { %s1099_s16 = scalar_lea.vmem %s5124_s13, %s4270_s0  ;;  %s5129_s29 = sld [smem:[#allocation28_spill]] (!%p3353_p7) }
  0xae   : > { %v3356_v0 = vld [vmem:[%s5125_s14] sm:$0xf]  ;;  %v3516_v1 = vld [vmem:[%s5125_s14] sm:$0x10]  ;;  %vm1123_vm0 = vcmask 1043456   ;;  %vm1124_vm1 = vcmask 1044480  }
  0xaf   : > { %v3357_v2 = vor.u32 %v3516_v1, %v3356_v0  ;;  %v3893_v3 = vmov 65535   ;;  %vm1119_vm2 = vcmask 72704   ;;  %vm1171_vm5 = vcmask 261120  }
  0xb0   : > { %v1125_v4 = vsel %vm1123_vm0, 4294967295, %v3893_v3  ;;  %v1105_v5 = vld [vmem:[%s5126_s25] sm:$0xff]  ;;  %v1106_v6 = vld [vmem:[%s5126_s25 + $0x8] sm:$0xff] }
  0xb1   : > { %v1126_v7 = vsel %vm1124_vm1, %v1125_v4, 0  ;;  %v1107_v9 = vpack.c.bf16 %v1106_v6, %v1105_v5  ;;  %v3518_v10 = vld [vmem:[%s5127_s21 + $0x8] sm:$0xff]  ;;  %v3517_v11 = vld [vmem:[%s5127_s21] sm:$0xff] }
  0xb2   : > { %v1128_v8 = vand.u32 %v3357_v2, %v1126_v7  ;;  %1181 = vmatpush.bf16.msra.mxu1 %v3518_v10  ;;  %v3626_v13 = vld [vmem:[%s5128_s28] ss:$0 sm:$0xff] }
  0xb3   : > { %v3627_v22 = vld [vmem:[%s5129_s29] ss:$0 sm:$0xff] }
  0xb4   : > { %1137 = vmatpush.bf16.msra.mxu0 %v1128_v8 }
  0xb6   : > { %1182 = vmatpush.bf16.msra.mxu1 %v3517_v11 }
  0xb7   : > { %3358 = vmatmul.msk.bf16.vlgmr.msra.gmra.mxu0 %vm1119_vm2, %v1107_v9 }
 0x134   : > { %v1139_v12 = vpop.f32.mrf.mxu0 }
 0x135   : > { %v1140_v14 = vadd.f32 %v3626_v13, %v1139_v12 }
 0x137   : > { %v1146_v16 = vmul.f32 0.01, %v1140_v14  ;;  %vm1144_vm3 = vcmp.gt.f32.partialorder %v1140_v14, 0.0 }
 0x139   : > { %v1148_v19 = vsel %vm1144_vm3, %v1140_v14, %v1146_v16 }
 0x13c   : > { %v1141_v15 = vpop.f32.mrf.mxu0 }
 0x13d   : > { %v1142_v17 = vadd.f32 %v3626_v13, %v1141_v15 }
 0x13f   : > { %vm1145_vm4 = vcmp.gt.f32.partialorder %v1142_v17, 0.0  ;;  %v1147_v18 = vmul.f32 0.01, %v1142_v17 }
 0x141   : > { %v1149_v20 = vsel %vm1145_vm4, %v1142_v17, %v1147_v18 }
 0x142   : > { %v1150_v21 = vpack.c.bf16 %v1149_v20, %v1148_v19 }
 0x144   : > { %3367 = vmatmul.msk.bf16.vlgmr.msra.gmra.mxu1 %vm1171_vm5, %v1150_v21 }
 0x1c1   : > { %v1184_v23 = vpop.f32.mrf.mxu1 }
 0x1c2   : > { %v1185_v24 = vadd.f32 %v3627_v22, %v1184_v23 }
 0x1c4   : > { %1189 = vst.msk [vmem:[#allocation2] sm:$0xff] %vm1171_vm5, %v1185_v24 }
 0x1c9   : > { %v1186_v25 = vpop.f32.mrf.mxu1 }
 0x1ca   : > { %v1187_v26 = vadd.f32 %v3627_v22, %v1186_v25 }
 0x1cc   : > { %1190 = vst.msk [vmem:[#allocation2 + $0x8] sm:$0xff] %vm1171_vm5, %v1187_v26 }
 0x1cd PF: > { %v1191_v27 = vld [vmem:[#allocation2] sm:$0xff]  ;;  %s5130_s18 = sld [smem:[#allocation23_spill]]  ;;  %vm1213_vm6 = vcmask 130048   ;;  %v3524_v39 = vld [vmem:[%s938_s24 + $0x8] sm:$0xff]  ;;  %vm1363_vm7 = vcmask 1040384   ;;  %vm1356_vm8 = vcmask 15360  }
 0x1ce   : > { %s5131_s13 = sld [smem:[#allocation24_spill]]  ;;  %v3522_v40 = vld [vmem:[%s928_s11 + $0x8] sm:$0xff]  ;;  %1307 = vmatpush.bf16.msra.mxu2 %v3524_v39  ;;  %v3523_v41 = vld [vmem:[%s938_s24] sm:$0xff]  ;;  %vm1294_vm9 = vcmask 261120   ;;  %vm1485_vm13 = vcmask 195584   ;;  %s5138_s26 = scalar_lea.vmem [#allocation10], %s4243_s1 }
 0x1cf   : > { %1343 = vmatpush.bf16.msra.mxu3 %v3522_v40  ;;  %v3521_v42 = vld [vmem:[%s928_s11] sm:$0xff]  ;;  %s5133_s2 = sld [smem:[#allocation22_spill]]  ;;  %v3526_v3 = vld [vmem:[%s948_s30 + $0x8] sm:$0xff]  ;;  %s5139_s6 = smov %s5138_s26 }
 0x1d0   : > { %v1355_v43 = vld [vmem:[%s1087_s8] sm:$0x1]  ;;  %p3441_p10 = scmp.ne.s32.totalorder %s4071_s9, 4 }
 0x1d1   : > { %v1365_v44 = vsel %vm1363_vm7, %v1355_v43, 0  ;;  %v3525_v4 = vld [vmem:[%s948_s30] sm:$0xff] }
 0x1d2   : > { %1308 = vmatpush.bf16.msra.mxu2 %v3523_v41  ;;  %v3628_v12 = vld [vmem:[%s1090_s23] ss:$0 sm:$0xff] }
 0x1d3   : > { %v1192_v28 = vld [vmem:[#allocation2 + $0x8] sm:$0xff]  ;;  %v4320_v29 = vld [vmem:[%s5130_s18] sm:$0xff]   ;;  %1344 = vmatpush.bf16.msra.mxu3 %v3521_v42 }
 0x1d4   : > { %v4322_v30 = vpack.c.bf16 %v1192_v28, %v1191_v27  ;;  %v3519_v31 = vld [vmem:[%s5130_s18] sm:$0xff]  ;;  %v4337_v33 = vld [vmem:[%s5130_s18 + $0x8] sm:$0xf] }
 0x1d5   : > { %v3520_v32 = vld [vmem:[%s5131_s13] sm:$0xff]  ;;  %v4342_v34 = vld [vmem:[%s5131_s13 + $0x8] sm:$0xf]  ;;  %v1210_v35 = vunpack.c.l.b16 %v4337_v33  ;;  %v1202_v48 = vld [vmem:[%s5133_s2 + $0x10] sm:$0xff] }
 0x1d6   : > { %1227 = vmatpush.bf16.msra.mxu0 %v4322_v30  ;;  %1259 = vmatpush.bf16.msra.mxu1 %v4322_v30  ;;  %v1243_v36 = vunpack.c.l.b16 %v4342_v34  ;;  %v1200_v45 = vld [vmem:[%s5133_s2] sm:$0xff]  ;;  %v1201_v46 = vld [vmem:[%s5133_s2 + $0x8] sm:$0xff]  ;;  %v1204_v49 = vpack.c.bf16 %v1202_v48, %v1202_v48  ;;  %v1452_v6 = vunpack.c.l.bf16 %v4342_v34  ;;  %s5140_s2 = scalar_lea.vmem [#allocation11], %s4243_s1 }
 0x1d7   : > { %v1212_v37 = vpack.c.b16 %v1210_v35, %v1210_v35  ;;  %v1203_v47 = vpack.c.bf16 %v1201_v46, %v1200_v45  ;;  %v4377_v63 = vld [vmem:[%s5131_s13] sm:$0xff]   ;;  %s5141_s10 = smov %s5140_s2 }
 0x1d8   : > { %v1245_v38 = vpack.c.b16 %v1243_v36, %v1243_v36  ;;  %v1450_v0 = vunpack.c.l.bf16 %v4377_v63  ;;  %v1451_v2 = vunpack.c.h.bf16 %v4377_v63  ;;  %v3629_v40 = vld [vmem:[%s1093_s20] ss:$0 sm:$0xff]  ;;  %s5136_s20 = scalar_lea.vmem [#allocation8], %s4243_s1 }
 0x1d9   : > { %3372 = vmatmul.msk.bf16.vlgmr.msra.gmra.mxu0 %vm1213_vm6, %v3519_v31  ;;  %3378 = vmatmul.msk.bf16.vlgmr.msra.gmra.mxu1 %vm1213_vm6, %v3520_v32  ;;  %v3530_v48 = vld [vmem:[%s5136_s20 + $0x8] sm:$0xff]  ;;  %s5137_s7 = smov %s5136_s20 }
 0x1da   : > { %1374 = vmatpush.bf16.msrb.mxu0 %v1365_v44  ;;  %1453 = vxpose.xlu0.b32.start [1/3] (short) (narrow) %v1450_v0, 16 }
 0x1db   : > { %1438 = vmatpush.bf16.msrb.mxu1 %v3526_v3 }
 0x1df   : > { %1439 = vmatpush.bf16.msrb.mxu1 %v3525_v4 }
 0x1e2   : > { %1454 = vxpose.xlu0.b32.cont [2/3] (short) (narrow) %v1451_v2, 16 }
 0x1e9   : > { %3373 = vmatmul.msk.bf16.gmra.mxu0 %vm1213_vm6, %v1212_v37  ;;  %3379 = vmatmul.msk.bf16.gmra.mxu1 %vm1213_vm6, %v1245_v38 }
 0x1ea   : > { %1455 = vxpose.xlu0.b32.end [3/3] (short) (narrow) %v1452_v6, 16 }
 0x1f9   : > { %3400 = vmatmul.msk.bf16.vlgmr.msrb.gmra.mxu0 %vm1356_vm8, %v1203_v47 }
 0x209   : > { %3401 = vmatmul.msk.bf16.gmra.mxu0 %vm1356_vm8, %v1204_v49  ;;  %v3529_v49 = vld [vmem:[%s5137_s7] sm:$0xff] }
 0x256   : > { %v1229_v50 = vpop.f32.mrf.mxu0  ;;  %v1261_v51 = vpop.f32.mrf.mxu1 }
 0x25e   : > { %v1231_v52 = vpop.f32.mrf.mxu0  ;;  %v1263_v53 = vpop.f32.mrf.mxu1 }
 0x25f   : > { %v1270_v54 = vpack.c.bf16 %v1231_v52, %v1229_v50  ;;  %v1276_v55 = vpack.c.bf16 %v1263_v53, %v1261_v51  ;;  %v3528_v50 = vld [vmem:[%s5138_s26 + $0x8] sm:$0xff]  ;;  %v3527_v51 = vld [vmem:[%s5139_s6] sm:$0xff] }
 0x260   : > { %1545 = vmatpush.bf16.msrb.mxu3 %v3528_v50 }
 0x261   : > { %3388 = vmatmul.msk.bf16.vlgmr.msra.gmra.mxu2 %vm1294_vm9, %v1276_v55  ;;  %3398 = vmatmul.msk.bf16.vlgmr.msra.gmra.mxu3 %vm1294_vm9, %v1270_v54  ;;  %v3532_v55 = vld [vmem:[%s5140_s2 + $0x8] sm:$0xff] }
 0x264   : > { %1546 = vmatpush.bf16.msrb.mxu3 %v3527_v51 }
 0x266   : > { %v1234_v56 = vpop.f32.mrf.mxu0  ;;  %v1266_v57 = vpop.f32.mrf.mxu1 }
 0x267   : > { %v1271_v58 = vpack.c.bf16 %v1234_v56, %v1234_v56  ;;  %v1277_v59 = vpack.c.bf16 %v1266_v57, %v1266_v57  ;;  %v3531_v56 = vld [vmem:[%s5141_s10] sm:$0xff] }
 0x268   : > { %1624 = vmatpush.bf16.msra.mxu3 %v3532_v55 }
 0x26c   : > { %1625 = vmatpush.bf16.msra.mxu3 %v3531_v56 }
 0x26e   : > { %v1236_v60 = vpop.f32.mrf.mxu0  ;;  %v1268_v61 = vpop.f32.mrf.mxu1 }
 0x271   : > { %3389 = vmatmul.msk.bf16.gmra.mxu2 %vm1294_vm9, %v1277_v59  ;;  %3399 = vmatmul.msk.bf16.gmra.mxu3 %vm1294_vm9, %v1271_v58 }
 0x276   : > { %v1376_v62 = vpop.f32.mrf.mxu0 }
 0x27e   : > { %v1378_v1 = vpop.f32.mrf.mxu0  ;;  %v1469_v44 = vpop.trf.xlu0 }
 0x286   : > { %v1381_v5 = vpop.f32.mrf.mxu0  ;;  %v1470_v47 = vpop.trf.xlu0 }
 0x28e   : > { %v1383_v7 = vpop.f32.mrf.mxu0 }
 0x2e4   : > { %v1310_v8 = vpop.f32.mrf.mxu2  ;;  %v1346_v9 = vpop.f32.mrf.mxu3 }
 0x2e5   : > { %v1347_v10 = vadd.f32 %v1346_v9, %v1310_v8 }
 0x2e7   : > { %v1385_v11 = vadd.f32 %v1376_v62, %v1347_v10  ;;  %v3631_v10 = vld [vmem:[%s1099_s16] ss:$0 sm:$0xff] }
 0x2e9   : > { %v1392_v15 = vadd.f32 %v3628_v12, %v1385_v11 }
 0x2eb   : > { %v1398_v18 = vmul.f32 0.01, %v1392_v15  ;;  %vm1395_vm10 = vcmp.gt.f32.partialorder %v1392_v15, 0.0 }
 0x2ec   : > { %v1312_v13 = vpop.f32.mrf.mxu2  ;;  %v1348_v14 = vpop.f32.mrf.mxu3 }
 0x2ed   : > { %v1349_v16 = vadd.f32 %v1348_v14, %v1312_v13  ;;  %v1401_v24 = vsel %vm1395_vm10, %v1392_v15, %v1398_v18 }
 0x2ef   : > { %v1386_v17 = vadd.f32 %v1378_v1, %v1349_v16 }
 0x2f1   : > { %v1393_v19 = vadd.f32 %v3628_v12, %v1386_v17 }
 0x2f3   : > { %vm1396_vm11 = vcmp.gt.f32.partialorder %v1393_v19, 0.0  ;;  %v1399_v20 = vmul.f32 0.01, %v1393_v19 }
 0x2f4   : > { %v1315_v21 = vpop.f32.mrf.mxu2  ;;  %v1351_v22 = vpop.f32.mrf.mxu3 }
 0x2f5   : > { %v1352_v23 = vadd.f32 %v1351_v22, %v1315_v21  ;;  %v1402_v25 = vsel %vm1396_vm11, %v1393_v19, %v1399_v20 }
 0x2f6   : > { %v1404_v26 = vpack.c.bf16 %v1402_v25, %v1401_v24 }
 0x2f7   : > { %v1387_v27 = vadd.f32 %v1381_v5, %v1352_v23 }
 0x2f8   : > { %3410 = vmatmul.msk.bf16.vlgmr.msrb.gmra.mxu1 %vm1294_vm9, %v1404_v26 }
 0x2f9   : > { %v1394_v28 = vadd.f32 %v3628_v12, %v1387_v27 }
 0x2fb   : > { %v1400_v35 = vmul.f32 0.01, %v1394_v28  ;;  %vm1397_vm12 = vcmp.gt.f32.partialorder %v1394_v28, 0.0 }
 0x2fc   : > { %v1317_v31 = vpop.f32.mrf.mxu2  ;;  %v1353_v32 = vpop.f32.mrf.mxu3 }
 0x2fd   : > { %v1403_v36 = vsel %vm1397_vm12, %v1394_v28, %v1400_v35 }
 0x2fe   : > { %v1405_v37 = vpack.c.bf16 %v1403_v36, %v1403_v36 }
 0x308   : > { %3411 = vmatmul.msk.bf16.gmra.mxu1 %vm1294_vm9, %v1405_v37 }
 0x375   : > { %v1441_v38 = vpop.f32.mrf.mxu1 }
 0x376   : > { %v1442_v45 = vadd.f32 %v3629_v40, %v1441_v38 }
 0x37d   : > { %v1443_v39 = vpop.f32.mrf.mxu1 }
 0x37e   : > { %v1444_v43 = vadd.f32 %v3629_v40, %v1443_v39 }
 0x385   : > { %v1446_v41 = vpop.f32.mrf.mxu1 }
 0x386   : > { %v1447_v42 = vadd.f32 %v3629_v40, %v1446_v41 }
 0x388   : > { %1505 = vmatpush.msrb.mxu2 %v1447_v42 }
 0x38a   : > { %1506 = vmatpush.msrb.mxu2 %v1444_v43 }
 0x38c   : > { %1507 = vmatpush.msrb.mxu2 %v1442_v45 }
 0x38d   : > { %v1448_v46 = vpop.f32.mrf.mxu1  ;;  %3412 = vmatmul.msk.f32.vlgmr.msrb.gmra.mxu2 %vm1485_vm13, %v1469_v44 }
 0x38e   : > { %1574 = vmatpush.bf16.msra.mxu2 %v3530_v48 }
 0x392   : > { %1575 = vmatpush.bf16.msra.mxu2 %v3529_v49 }
 0x395   : > { %3413 = vmatmul.msk.f32.gmra.mxu2 %vm1485_vm13, %v1470_v47 }
 0x39d   : > { %3431 = vmatmul.msk.bf16.vlgmr.msra.gmra.mxu2 %vm1294_vm9, %v4322_v30  ;;  %v3630_v30 = vld [vmem:[%s1096_s3] ss:$0 sm:$0xff] }
 0x410   : > { %v1509_v52 = vpop.f32.mrf.mxu2 }
 0x418   : > { %v1512_v53 = vpop.f32.mrf.mxu2 }
 0x419   : > { %v1523_v54 = vpack.c.bf16 %v1512_v53, %v1509_v52 }
 0x41b   : > { %3422 = vmatmul.msk.bf16.vlgmr.msrb.gmra.mxu3 %vm1294_vm9, %v1523_v54 }
 0x420   : > { %v1577_v57 = vpop.f32.mrf.mxu2 }
 0x428   : > { %v1579_v62 = vpop.f32.mrf.mxu2 }
 0x49e   : > { %v1548_v58 = vpop.f32.mrf.mxu3 }
 0x49f   : > { %v1578_v59 = vadd.f32 %v1577_v57, %v1548_v58 }
 0x4a1   : > { %v1586_v60 = vadd.f32 %v3630_v30, %v1578_v59 }
 0x4a3   : > { %v1590_v3 = vmul.f32 0.01, %v1586_v60  ;;  %vm1588_vm14 = vcmp.gt.f32.partialorder %v1586_v60, 0.0 }
 0x4a5   : > { %v1592_v7 = vsel %vm1588_vm14, %v1586_v60, %v1590_v3 }
 0x4a6   : > { %v1550_v61 = vpop.f32.mrf.mxu3 }
 0x4a7   : > { %v1580_v1 = vadd.f32 %v1579_v62, %v1550_v61 }
 0x4a9   : > { %v1587_v4 = vadd.f32 %v3630_v30, %v1580_v1 }
 0x4ab   : > { %vm1589_vm15 = vcmp.gt.f32.partialorder %v1587_v4, 0.0  ;;  %v1591_v5 = vmul.f32 0.01, %v1587_v4 }
 0x4ad   : > { %v1593_v8 = vsel %vm1589_vm15, %v1587_v4, %v1591_v5 }
 0x4ae   : > { %v1594_v9 = vpack.c.bf16 %v1593_v8, %v1592_v7 }
 0x4b0   : > { %3440 = vmatmul.msk.bf16.vlgmr.msra.gmra.mxu3 %vm1294_vm9, %v1594_v9 }
 0x533   : > { %v1627_v11 = vpop.f32.mrf.mxu3 }
 0x534   : > { %v1628_v12 = vadd.f32 %v3631_v10, %v1627_v11 }
 0x536   : > { %vm1632_vm0 = vcmp.gt.f32.partialorder %v1628_v12, 0.0  ;;  %v1634_v13 = vmul.f32 0.01, %v1628_v12 }
 0x538   : > { %v1636_v14 = vsel %vm1632_vm0, %v1628_v12, %v1634_v13 }
 0x539   : > { %1638 = vst.msk [vmem:[#allocation2] sm:$0xff] %vm1294_vm9, %v1636_v14 }
 0x53b   : > { %v1629_v15 = vpop.f32.mrf.mxu3 }
 0x53c   : > { %v1630_v16 = vadd.f32 %v3631_v10, %v1629_v15 }
 0x53d   : > { %1643 = sbr.rel (%p3441_p10) target bundleno = 2768 (0xad0), region = 160 }
 0x53e   : > { %vm1633_vm1 = vcmp.gt.f32.partialorder %v1630_v16, 0.0  ;;  %v1635_v17 = vmul.f32 0.01, %v1630_v16 }
 0x540   : > { %v1637_v18 = vsel %vm1633_vm1, %v1630_v16, %v1635_v17 }
 0x541   : > { %1639 = vst.msk [vmem:[#allocation2 + $0x8] sm:$0xff] %vm1294_vm9, %v1637_v18 }
 0x542   : > { %s5144_s16 = sld [smem:[#allocation37_spill]]  ;;  %v1644_v23 = vld [vmem:[#allocation2] sm:$0xff]  ;;  %v5069_v27 = vmov 0.0   ;;  %s3895_s10 = smov 127   ;;  %v5071_v42 = vmov 7   ;;  %v3897_v43 = vmov 8   ;;  %v1806_v5 = vlaneseq }
 0x543   : > { %s5145_s29 = sld [smem:[#allocation41_spill]]  ;;  %3637 = vset.pattern.permute.xlu0 %v5071_v42  ;;  %3643 = vset.pattern.permute.xlu1 %v3897_v43  ;;  %s3898_s11 = smov 126  }
 0x544   : > { %s5146_s26 = sld [smem:[#allocation21_spill]]  ;;  %v4484_v7 = vand.u32 127, %v1806_v5  ;;  %s3908_s23 = smov 2  }
 0x545   : > { %s5147_s24 = sld [smem:[#allocation39_spill]]  ;;  %s3909_s25 = smov 1  }
 0x546   : > { %s5148_s0 = sld [smem:[#allocation43_spill]]  ;;  %vm1808_vm10 = vcmp.eq.s32.totalorder %v4484_v7, 2 }
 0x547   : > { %s5149_s30 = sld [smem:[#allocation38_spill]]  ;;  %v4488_v10 = vsel %vm1808_vm10, 1.0, %v5069_v27 }
 0x548   : > { %v3534_v19 = vld [vmem:[%s5144_s16 + $0x8] sm:$0xff]  ;;  %v3533_v21 = vld [vmem:[%s5144_s16] sm:$0xff]  ;;  %s5150_s20 = sld [smem:[#allocation42_spill]]  ;;  %5151 = vst [vmem:[#allocation20_spill] sm:$0xff] %v4488_v10 }
 0x549   : > { %v3538_v20 = vld [vmem:[%s5145_s29 + $0x8] sm:$0xff]  ;;  %v3537_v22 = vld [vmem:[%s5145_s29] sm:$0xff]  ;;  %1676 = vmatpush.bf16.msra.mxu0 %v3534_v19  ;;  %s5153_s19 = sld [smem:[#allocation40_spill]] }
 0x54a   : > { %v1645_v24 = vld [vmem:[#allocation2 + $0x8] sm:$0xff]  ;;  %1754 = vmatpush.bf16.msra.mxu2 %v3538_v20  ;;  %v1798_v25 = vld [vmem:[%s5146_s26] sm:$0xff]  ;;  %s5167_s28 = sld [smem:[#allocation22_spill]] }
 0x54b   : > { %v1799_v26 = vld [vmem:[%s5146_s26 + $0x8] sm:$0xff]  ;;  %vm1800_vm2 = vcmp.eq.f32.partialorder %v1798_v25, 1.0  ;;  %v1646_v32 = vpack.c.bf16 %v1645_v24, %v1644_v23  ;;  %v3535_v37 = vld [vmem:[%s5147_s24] sm:$0xff]  ;;  %s5152_s26 = sld [smem:[#allocation44_spill]] }
 0x54c   : > { %vm1801_vm3 = vcmp.eq.f32.partialorder %v1799_v26, 1.0  ;;  %v4454_v28 = vsel %vm1800_vm2, 1.0, %v5069_v27  ;;  %v3536_v36 = vld [vmem:[%s5147_s24 + $0x8] sm:$0xff]  ;;  %v3539_v38 = vld [vmem:[%s5148_s0] sm:$0xff]  ;;  %s5174_s7 = sld [smem:[#allocation45_spill]] }
 0x54d   : > { %v4457_v31 = vsel %vm1801_vm3, 1.0, %v5069_v27  ;;  %1677 = vmatpush.bf16.msra.mxu0 %v3533_v21  ;;  %1720 = vmatpush.bf16.msra.mxu1 %v3536_v36  ;;  %v3659_v47 = vld [vmem:[%s5149_s30] ss:$0 sm:$0xff]  ;;  %s3906_s30 = smov 4  }
 0x54e   : > { %v3632_v35 = vpack.i.bf16 %v4454_v28, %v4457_v31  ;;  %1755 = vmatpush.bf16.msra.mxu2 %v3537_v22  ;;  %1791 = vmatpush.bf16.msra.mxu3 %v3539_v38  ;;  %v3660_v52 = vld [vmem:[%s5150_s20] ss:$0 sm:$0xff] }
 0x54f   : > { %v3661_v26 = vld [vmem:[%s5153_s19] ss:$0 sm:$0xff] }
 0x550   : > { %3633 = vrot.lane.b32.xlu0 %v3632_v35, %s3895_s10  ;;  %3450 = vmatmul.msk.bf16.vlgmr.msra.gmra.mxu0 %vm1294_vm9, %v1646_v32 }
 0x551   : > { %3468 = vmatmul.msk.bf16.vlgmr.msra.gmra.mxu2 %vm1294_vm9, %v1646_v32  ;;  %1721 = vmatpush.bf16.msra.mxu1 %v3535_v37  ;;  %v3662_v15 = vld [vmem:[%s5152_s26] ss:$0 sm:$0xff] }
 0x552   : > { %3645 = vperm.xlu1 %3643, %v3632_v35   ;;  %s5175_s26 = smov %s5174_s7 }
 0x5c2   : > { %v3634_v39 = vpop.permute.xlu0 %3633 }
 0x5c3   : > { %v3636_v40 = vunpack.i.h.bf16 %v3634_v39  ;;  %v3635_v41 = vunpack.i.l.bf16 %v3634_v39 }
 0x5c4   : > { %v3646_v11 = vpop.permute.xlu1 %3645 }
 0x5c5   : > { %v1828_v44 = vmax.f32 %v4454_v28, %v3636_v40  ;;  %v1829_v45 = vmax.f32 %v4457_v31, %v3635_v41  ;;  %v3648_v13 = vunpack.i.h.bf16 %v3646_v11  ;;  %v3647_v21 = vunpack.i.l.bf16 %v3646_v11 }
 0x5c7   : > { %v3638_v46 = vpack.i.bf16 %v1828_v44, %v1829_v45 }
 0x5c9   : > { %3639 = vperm.xlu0 %3637, %v3638_v46  }
 0x5cd   : > { %v1679_v48 = vpop.f32.mrf.mxu0 }
 0x5ce   : > { %v1680_v49 = vadd.f32 %v3659_v47, %v1679_v48 }
 0x5d0   : > { %v1686_v51 = vmul.f32 0.01, %v1680_v49  ;;  %vm1684_vm4 = vcmp.gt.f32.partialorder %v1680_v49, 0.0 }
 0x5d2   : > { %v1688_v57 = vsel %vm1684_vm4, %v1680_v49, %v1686_v51 }
 0x5d4   : > { %v1757_v50 = vpop.f32.mrf.mxu2 }
 0x5d5   : > { %v1681_v53 = vpop.f32.mrf.mxu0  ;;  %v1758_v55 = vadd.f32 %v3660_v52, %v1757_v50 }
 0x5d6   : > { %v1682_v54 = vadd.f32 %v3659_v47, %v1681_v53 }
 0x5d7   : > { %v1764_v60 = vmul.f32 0.01, %v1758_v55  ;;  %vm1762_vm7 = vcmp.gt.f32.partialorder %v1758_v55, 0.0 }
 0x5d8   : > { %v1687_v56 = vmul.f32 0.01, %v1682_v54  ;;  %vm1685_vm5 = vcmp.gt.f32.partialorder %v1682_v54, 0.0 }
 0x5d9   : > { %v1766_v1 = vsel %vm1762_vm7, %v1758_v55, %v1764_v60  ;;  %v5074_v55 = vunpack.c.l.bf16 %v4320_v29 }
 0x5da   : > { %v1689_v58 = vsel %vm1685_vm5, %v1682_v54, %v1687_v56 }
 0x5db   : > { %v1690_v30 = vpack.c.bf16 %v1689_v58, %v1688_v57  ;;  %v5073_v57 = vunpack.c.h.bf16 %v4320_v29  ;;  %v5072_v58 = vunpack.c.l.bf16 %v4337_v33 }
 0x5dc   : > { %v1759_v59 = vpop.f32.mrf.mxu2 }
 0x5dd   : > { %v1760_v61 = vadd.f32 %v3660_v52, %v1759_v59  ;;  %3459 = vmatmul.msk.bf16.vlgmr.msra.gmra.mxu1 %vm1294_vm9, %v1690_v30  ;;  %vm1811_vm9 = vcmp.eq.s32.totalorder %v4484_v7, 3 }
 0x5de   : > { %v3477_v14 = vsel %vm1811_vm9, 1.0, %v5069_v27 }
 0x5df   : > { %v1765_v62 = vmul.f32 0.01, %v1760_v61  ;;  %vm1763_vm8 = vcmp.gt.f32.partialorder %v1760_v61, 0.0  ;;  %v1854_v18 = vmul.f32 %v3648_v13, %v3477_v14  ;;  %v1855_v32 = vmul.f32 %v3647_v21, %v3477_v14 }
 0x5e1   : > { %v1767_v3 = vsel %vm1763_vm8, %v1760_v61, %v1765_v62  ;;  %v1856_v24 = vsub.f32 1.0, %v1854_v18  ;;  %v1857_v39 = vsub.f32 1.0, %v1855_v32  ;;  %v3901_v32 = vmov 2131351028  }
 0x5e2   : > { %v1768_v4 = vpack.c.bf16 %v1767_v3, %v1766_v1 }
 0x5e4   : > { %3473 = vmatmul.msk.bf16.vlgmr.msra.gmra.mxu3 %vm1213_vm6, %v1768_v4 }
 0x63b   : > { %v3640_v8 = vpop.permute.xlu0 %3639 }
 0x63c   : > { %v3642_v9 = vunpack.i.h.bf16 %v3640_v8  ;;  %v3641_v17 = vunpack.i.l.bf16 %v3640_v8 }
 0x63e   : > { %v1840_v12 = vmul.f32 %v3642_v9, %v4488_v10  ;;  %v1841_v23 = vmul.f32 %v3641_v17, %v4488_v10 }
 0x640   : > { %v1842_v16 = vsub.f32 1.0, %v1840_v12  ;;  %v1843_v35 = vsub.f32 1.0, %v1841_v23 }
 0x65a   : > { %v1723_v19 = vpop.f32.mrf.mxu1 }
 0x65b   : > { %v1724_v38 = vadd.f32 %v3661_v26, %v1723_v19  ;;  %v3899_v19 = vmov 1326507024  }
 0x662   : > { %v1725_v41 = vpop.f32.mrf.mxu1 }
 0x663   : > { %v1726_v45 = vadd.f32 %v3661_v26, %v1725_v41 }
 0x667   : > { %v1793_v20 = vpop.f32.mrf.mxu3 }
 0x668   : > { %v1794_v22 = vadd.f32 %v3662_v15, %v1793_v20 }
 0x66a   : > { %v1844_v25 = vmul.f32 %v1842_v16, %v1794_v22 }
 0x66c   : > { %v1858_v36 = vmul.f32 %v1856_v24, %v1844_v25  ;;  %v3900_v24 = vmov 920167782  }
 0x66e   : > { %v1860_v43 = vsub.f32 %v1724_v38, %v1858_v36 }
 0x66f   : > { %v1795_v37 = vpop.f32.mrf.mxu3 }
 0x670   : > { %v1796_v40 = vadd.f32 %v3662_v15, %v1795_v37  ;;  %v1862_v47 = vsub.f32 %v1860_v43, %v1858_v36  ;;  %v3902_v37 = vmov 2475754826  }
 0x672   : > { %v1845_v44 = vmul.f32 %v1843_v35, %v1796_v40  ;;  %v4500_v50 = vsub.f32 %v1862_v47, %v1858_v36  ;;  %v3903_v40 = vmov 2102212464  }
 0x674   : > { %v1859_v46 = vmul.f32 %v1857_v39, %v1845_v44 }
 0x676   : > { %v1861_v48 = vsub.f32 %v1726_v45, %v1859_v46 }
 0x678   : > { %v1863_v49 = vsub.f32 %v1861_v48, %v1859_v46 }
 0x67a   : > { %v4502_v51 = vsub.f32 %v1863_v49, %v1859_v46 }
 0x67c   : > { %v3649_v52 = vpack.i.bf16 %v4500_v50, %v4502_v51 }
 0x67e   : > { %3650 = vrot.lane.b32.xlu1 %v3649_v52, %s3898_s11 }
 0x6f0   : > { %v3651_v53 = vpop.permute.xlu1 %3650 }
 0x6f1   : > { %v3652_v54 = vunpack.i.l.bf16 %v3651_v53  ;;  %v3653_v56 = vunpack.i.h.bf16 %v3651_v53 }
 0x6f3   : > { %1900 = vmatpush.msrb.mxu3 %v3652_v54  ;;  %1935 = vmatpush.msrb.mxu0 %v3652_v54 }
 0x6f5   : > { %1901 = vmatpush.msrb.mxu3 %v3653_v56  ;;  %1936 = vmatpush.msrb.mxu0 %v3653_v56 }
 0x6f6   : > { %3480 = vmatmul.msk.f32.vlgmr.msrb.gmra.mxu3 %vm1213_vm6, %v5074_v55  ;;  %3483 = vmatmul.msk.f32.vlgmr.msrb.gmra.mxu0 %vm1213_vm6, %v1450_v0 }
 0x6fe   : > { %3481 = vmatmul.msk.f32.gmra.mxu3 %vm1213_vm6, %v5073_v57  ;;  %3484 = vmatmul.msk.f32.gmra.mxu0 %vm1213_vm6, %v1451_v2 }
 0x706   : > { %3482 = vmatmul.msk.f32.gmra.mxu3 %vm1213_vm6, %v5072_v58  ;;  %3485 = vmatmul.msk.f32.gmra.mxu0 %vm1213_vm6, %v1452_v6 }
 0x773   : > { %v1938_v0 = vpop.f32.mrf.mxu0 }
 0x779   : > { %v1903_v59 = vpop.f32.mrf.mxu3 }
 0x77a   : > { %v4527_v30 = vsub.f32 %v1903_v59, %v1938_v0  ;;  %v4529_v60 = vmul.f32 %v1938_v0, %v1903_v59 }
 0x77b   : > { %v1941_v61 = vpop.f32.mrf.mxu0 }
 0x77c   : > { %v1953_v63 = vand.u32 2139095040, %v4527_v30  ;;  %v5077_v6 = vand.u32 2147483647, %v4527_v30 }
 0x77e   : > { %v1954_v2 = vshrl.u32 %v1953_v63, 23  ;;  %v1957_v14 = vand.u32 8388607, %v5077_v6 }
 0x780   : > { %v3486_v62 = vadd.s32 4294967169, %v1954_v2  ;;  %v1958_v23 = vor.u32 8388608, %v1957_v14 }
 0x781   : > { %v1906_v1 = vpop.f32.mrf.mxu3 }
 0x782   : > { %v1960_v3 = vadd.s32 1, %v3486_v62  ;;  %v4532_v4 = vsub.f32 %v1906_v1, %v1941_v61  ;;  %v4534_v5 = vmul.f32 %v1941_v61, %v1906_v1  ;;  %v4556_v48 = vshll.u32 %v1958_v23, 8 }
 0x783   : > { %v1944_v12 = vpop.f32.mrf.mxu0  ;;  %v5079_v62 = vmov 683565275  }
 0x784   : > { %vm1961_vm11 = vcmp.gt.s32.totalorder %v1960_v3, 0  ;;  %v2107_v34 = vand.u32 2139095040, %v4532_v4  ;;  %v5076_v61 = vand.u32 2147483647, %v4532_v4 }
 0x785   : > { %v1962_v8 = vsel %vm1961_vm11, %v1960_v3, 0  ;;  %v4570_v3 = vand.u32 65535, %v4556_v48 }
 0x786   : > { %v1964_v9 = vand.u32 31, %v1962_v8  ;;  %v2108_v11 = vshrl.u32 %v2107_v34, 23  ;;  %v4545_v22 = vshrl.u32 %v1962_v8, 5  ;;  %v4576_v8 = vshrl.u32 %v4556_v48, 16 }
 0x788   : > { %v1965_v13 = vsub.s32 32, %v1964_v9  ;;  %v3489_v15 = vadd.s32 4294967169, %v2108_v11  ;;  %v1979_v25 = vshll.u32 %v3900_v24, %v1964_v9  ;;  %v1970_v38 = vshll.u32 %v3902_v37, %v1964_v9 }
 0x789   : > { %v1909_v16 = vpop.f32.mrf.mxu3  ;;  %v1973_v39 = vshll.u32 %v3901_v32, %v1964_v9  ;;  %v1976_v47 = vshll.u32 %v3903_v40, %v1964_v9  ;;  %vm1985_vm12 = vcmp.lt.s32.totalorder %v4545_v22, 4  ;;  %v1967_v1 = vshll.u32 %v5079_v62, %v1964_v9 }
 0x78a   : > { %v4540_v17 = vsub.f32 %v1909_v16, %v1944_v12  ;;  %v4542_v18 = vmul.f32 %v1944_v12, %v1909_v16  ;;  %v1980_v20 = vshrl.u32 %v3899_v19, %v1965_v13  ;;  %v2114_v21 = vadd.s32 1, %v3489_v15 }
 0x78b   : > { %v1971_v35 = vshrl.u32 %v3901_v32, %v1965_v13  ;;  %v1977_v36 = vshrl.u32 %v3900_v24, %v1965_v13  ;;  %v1974_v41 = vshrl.u32 %v3903_v40, %v1965_v13  ;;  %v1968_v0 = vshrl.u32 %v3902_v37, %v1965_v13 }
 0x78c   : > { %vm2115_vm6 = vcmp.gt.s32.totalorder %v2114_v21, 0  ;;  %v2261_v26 = vand.u32 2139095040, %v4540_v17  ;;  %v1981_v43 = vor.u32 %v1980_v20, %v1979_v25  ;;  %v5075_v45 = vand.u32 2147483647, %v4540_v17 }
 0x78d   : > { %v2116_v44 = vsel %vm2115_vm6, %v2114_v21, 0  ;;  %v1972_v49 = vor.u32 %v1971_v35, %v1970_v38  ;;  %v1975_v52 = vor.u32 %v1974_v41, %v1973_v39  ;;  %v1978_v53 = vor.u32 %v1977_v36, %v1976_v47 }
 0x78e   : > { %v2262_v46 = vshrl.u32 %v2261_v26, 23  ;;  %v4559_v54 = vand.u32 31, %v2116_v44  ;;  %v1995_v59 = vsel %vm1985_vm12, %v1981_v43, 1326507024  ;;  %v2265_v63 = vand.u32 8388607, %v5075_v45 }
 0x78f   : > { %vm1982_vm14 = vcmp.lt.s32.totalorder %v4545_v22, 1  ;;  %vm1984_vm15 = vcmp.lt.s32.totalorder %v4545_v22, 3  ;;  %v1969_v12 = vor.u32 %v1968_v0, %v1967_v1  ;;  %vm1983_vm1 = vcmp.lt.s32.totalorder %v4545_v22, 2 }
 0x790   : > { %v3492_v56 = vadd.s32 4294967169, %v2262_v46  ;;  %v1994_v34 = vsel %vm1982_vm14, %v1972_v49, %v1975_v52  ;;  %v4579_v11 = vsub.s32 32, %v4559_v54  ;;  %v1996_v9 = vsel %vm1984_vm15, %v1978_v53, %v1995_v59 }
 0x791   : > { %v2266_v14 = vor.u32 8388608, %v2265_v63  ;;  %v4586_v16 = vand.u32 8388607, %v5076_v61  ;;  %v1966_v21 = vshrl.u32 %v5079_v62, %v1965_v13  ;;  %v1987_v23 = vsel %vm1985_vm12, %v1975_v52, 2102212464 }
 0x792   : > { %v2268_v2 = vadd.s32 1, %v3492_v56  ;;  %v1997_v25 = vsel %vm1983_vm1, %v1994_v34, %v1996_v9  ;;  %v1991_v26 = vsel %vm1985_vm12, %v1978_v53, 920167782  ;;  %v4595_v35 = vshrl.u32 %v2116_v44, 5 }
 0x793   : > { %v2130_v36 = vshll.u32 %v3903_v40, %v4559_v54  ;;  %v2133_v38 = vshll.u32 %v3900_v24, %v4559_v54  ;;  %v2131_v13 = vshrl.u32 %v3900_v24, %v4579_v11  ;;  %v2134_v39 = vshrl.u32 %v3899_v19, %v4579_v11 }
 0x794   : > { %vm2269_vm0 = vcmp.gt.s32.totalorder %v2268_v2, 0  ;;  %v1986_v43 = vsel %vm1982_vm14, %v1966_v21, %v1969_v12  ;;  %v4609_v46 = vshll.u32 %v2266_v14, 8  ;;  %v1988_v44 = vsel %vm1984_vm15, %v1972_v49, %v1987_v23 }
 0x795   : > { %v2270_v15 = vsel %vm2269_vm0, %v2268_v2, 0  ;;  %v1990_v47 = vsel %vm1982_vm14, %v1969_v12, %v1972_v49  ;;  %v2002_v53 = vshrl.u32 %v1997_v25, 16  ;;  %v2001_v63 = vand.u32 65535, %v1997_v25 }
 0x796   : > { %v2272_v20 = vand.u32 31, %v2270_v15  ;;  %v4615_v56 = vshrl.u32 %v2270_v15, 5  ;;  %vm2139_vm2 = vcmp.lt.s32.totalorder %v4595_v35, 4  ;;  %v1992_v15 = vsel %vm1984_vm15, %v1975_v52, %v1991_v26 }
 0x797   : > { %v4645_v58 = vor.u32 %v2131_v13, %v2130_v36  ;;  %v1993_v26 = vsel %vm1983_vm1, %v1990_v47, %v1992_v15  ;;  %v2003_v22 = vmul.u32 %v2001_v63, %v4570_v3  ;;  %v3905_v15 = vmov 0  }
 0x798   : > { %v4605_v41 = vsub.s32 32, %v2272_v20  ;;  %v2284_v2 = vshll.u32 %v3903_v40, %v2272_v20  ;;  %v2287_v34 = vshll.u32 %v3900_v24, %v2272_v20  ;;  %v2278_v9 = vshll.u32 %v3902_v37, %v2272_v20 }
 0x799   : > { %v2281_v14 = vshll.u32 %v3901_v32, %v2272_v20  ;;  %v2275_v25 = vshll.u32 %v5079_v62, %v2272_v20  ;;  %vm2293_vm3 = vcmp.lt.s32.totalorder %v4615_v56, 4  ;;  %v4657_v20 = vand.u32 65535, %v4609_v46 }
 0x79a   : > { %v2279_v0 = vshrl.u32 %v3901_v32, %v4605_v41  ;;  %v2282_v59 = vshrl.u32 %v3903_v40, %v4605_v41  ;;  %v2285_v1 = vshrl.u32 %v3900_v24, %v4605_v41  ;;  %v2288_v49 = vshrl.u32 %v3899_v19, %v4605_v41 }
 0x79b   : > { %v2276_v12 = vshrl.u32 %v3902_v37, %v4605_v41  ;;  %v4636_v24 = vsel %vm1983_vm1, %v1986_v43, %v1988_v44  ;;  %v2004_v19 = vmul.u32 %v2002_v53, %v4570_v3  ;;  %v4652_v43 = vmul.u32 %v2001_v63, %v4576_v8 }
 0x79c   : > { %v2286_v21 = vor.u32 %v2285_v1, %v2284_v2  ;;  %v2289_v23 = vor.u32 %v2288_v49, %v2287_v34  ;;  %v4640_v27 = vor.u32 %v2279_v0, %v2278_v9  ;;  %v4642_v42 = vor.u32 %v2282_v59, %v2281_v14 }
 0x79d   : > { %v2135_v44 = vor.u32 %v2134_v39, %v2133_v38  ;;  %v4654_v2 = vor.u32 %v2276_v12, %v2275_v25  ;;  %v2007_v0 = vshll.u32 %v2004_v19, 16  ;;  %vm2290_vm4 = vcmp.lt.s32.totalorder %v4615_v56, 1 }
 0x79e   : > { %v2303_v52 = vsel %vm2293_vm3, %v2289_v23, 1326507024  ;;  %vm2292_vm5 = vcmp.lt.s32.totalorder %v4615_v56, 3  ;;  %v2299_v36 = vsel %vm2293_vm3, %v2286_v21, 920167782  ;;  %v2302_v38 = vsel %vm2290_vm4, %v4640_v27, %v4642_v42 }
 0x79f   : > { %v2304_v13 = vsel %vm2292_vm5, %v2286_v21, %v2303_v52  ;;  %v4671_v39 = vshrl.u32 %v4609_v46, 16  ;;  %v2024_v47 = vshrl.u32 %v1993_v26, 16  ;;  %v2009_v59 = vshll.u32 %v4652_v43, 16 }
 0x7a0   : > { %vm2011_vm7 = vc.u32 %v2003_v22, %v2007_v0  ;;  %v2013_v1 = vadd.s32 %v2007_v0, %v2003_v22  ;;  %v2023_v34 = vand.u32 65535, %v1993_v26  ;;  %vm2291_vm8 = vcmp.lt.s32.totalorder %v4615_v56, 2 }
 0x7a1   : > { %v2298_v63 = vsel %vm2290_vm4, %v4654_v2, %v4640_v27  ;;  %v2300_v49 = vsel %vm2292_vm5, %v4642_v42, %v2299_v36  ;;  %v2006_v12 = vmul.u32 %v2002_v53, %v4576_v8  ;;  %v2145_v9 = vsel %vm2139_vm2, %v4645_v58, 920167782 }
 0x7a2   : > { %v4688_v14 = vsel %vm2291_vm8, %v2302_v38, %v2304_v13  ;;  %v2012_v21 = vsel %vm2011_vm7, 1, %v3905_v15  ;;  %vm2015_vm10 = vc.u32 %v2013_v1, %v2009_v59  ;;  %v2149_v23 = vsel %vm2139_vm2, %v2135_v44, 1326507024 }
 0x7a3   : > { %v2014_v25 = vadd.s32 %v2012_v21, %v2006_v12  ;;  %v2016_v52 = vsel %vm2015_vm10, 1, %v3905_v15  ;;  %v2026_v53 = vmul.u32 %v2024_v47, %v4570_v3  ;;  %v4697_v26 = vsel %vm2291_vm8, %v2298_v63, %v2300_v49 }
 0x7a4   : > { %v2008_v0 = vshrl.u32 %v2004_v19, 16  ;;  %v2027_v36 = vmul.u32 %v2023_v34, %v4576_v8  ;;  %v2112_v22 = vor.u32 8388608, %v4586_v16  ;;  %v2309_v38 = vand.u32 65535, %v4688_v14 }
 0x7a5   : > { %v2018_v13 = vadd.s32 %v2016_v52, %v2014_v25  ;;  %v2025_v59 = vmul.u32 %v2023_v34, %v4570_v3  ;;  %v2029_v44 = vshll.u32 %v2026_v53, 16  ;;  %v2310_v1 = vshrl.u32 %v4688_v14, 16 }
 0x7a6   : > { %v2028_v12 = vmul.u32 %v2024_v47, %v4576_v8  ;;  %v2121_v21 = vshll.u32 %v5079_v62, %v4559_v54  ;;  %v2122_v19 = vshrl.u32 %v3902_v37, %v4579_v11  ;;  %v2031_v49 = vshll.u32 %v2027_v36, 16 }
 0x7a7   : > { %v2019_v63 = vadd.s32 %v2018_v13, %v2008_v0  ;;  %vm2033_vm9 = vc.u32 %v2025_v59, %v2029_v44  ;;  %v2035_v16 = vadd.s32 %v2029_v44, %v2025_v59  ;;  %v2124_v3 = vshll.u32 %v3902_v37, %v4559_v54 }
 0x7a8   : > { %v2034_v57 = vsel %vm2033_vm9, 1, %v3905_v15  ;;  %v4710_v25 = vor.u32 %v2122_v19, %v2121_v21  ;;  %v2125_v8 = vshrl.u32 %v3901_v32, %v4579_v11  ;;  %v5078_v47 = vshrl.u32 %v4697_v26, 16 }
 0x7a9   : > { %v2010_v34 = vshrl.u32 %v4652_v43, 16  ;;  %v2036_v52 = vadd.s32 %v2034_v57, %v2028_v12  ;;  %vm2037_vm11 = vc.u32 %v2035_v16, %v2031_v49  ;;  %v2127_v59 = vshll.u32 %v3901_v32, %v4559_v54 }
 0x7aa   : > { %v2038_v0 = vsel %vm2037_vm11, 1, %v3905_v15  ;;  %v4719_v13 = vor.u32 %v2125_v8, %v2124_v3  ;;  %v2128_v44 = vshrl.u32 %v3903_v40, %v4579_v11  ;;  %v4726_v37 = vmul.u32 %v2310_v1, %v4657_v20 }
 0x7ab   : > { %v2030_v21 = vshrl.u32 %v2026_v53, 16  ;;  %v2040_v19 = vadd.s32 %v2038_v0, %v2036_v52  ;;  %vm2136_vm6 = vcmp.lt.s32.totalorder %v4595_v35, 1  ;;  %v4729_v43 = vadd.s32 %v2019_v63, %v2010_v34 }
 0x7ac   : > { %v2129_v57 = vor.u32 %v2128_v44, %v2127_v59  ;;  %vm2138_vm12 = vcmp.lt.s32.totalorder %v4595_v35, 3  ;;  %v2144_v32 = vsel %vm2136_vm6, %v4710_v25, %v4719_v13  ;;  %v2032_v54 = vshrl.u32 %v2027_v36, 16 }
 0x7ad   : > { %v2041_v12 = vadd.s32 %v2040_v19, %v2030_v21  ;;  %v2150_v40 = vsel %vm2138_vm12, %v4645_v58, %v2149_v23  ;;  %v4739_v53 = vshll.u32 %v2112_v22, 8  ;;  %v4741_v3 = vadd.s32 %v2035_v16, %v2031_v49 }
 0x7ae   : > { %vm2137_vm14 = vcmp.lt.s32.totalorder %v4595_v35, 2  ;;  %v2146_v63 = vsel %vm2138_vm12, %v2129_v57, %v2145_v9  ;;  %v2148_v8 = vsel %vm2136_vm6, %v4719_v13, %v2129_v57  ;;  %v2315_v36 = vshll.u32 %v4726_v37, 16 }
 0x7af   : > { %v2042_v34 = vadd.s32 %v2041_v12, %v2032_v54  ;;  %v2147_v52 = vsel %vm2137_vm14, %v2144_v32, %v2146_v63  ;;  %v2151_v58 = vsel %vm2137_vm14, %v2148_v8, %v2150_v40  ;;  %vm2045_vm15 = vc.u32 %v4729_v43, %v4741_v3 }
 0x7b0   : > { %v2153_v23 = vand.u32 65535, %v4739_v53  ;;  %v2154_v9 = vshrl.u32 %v4739_v53, 16  ;;  %v2155_v22 = vand.u32 65535, %v2151_v58  ;;  %v2156_v16 = vshrl.u32 %v2151_v58, 16 }
 0x7b1   : > { %v2046_v49 = vadd.s32 1, %v2042_v34  ;;  %v2177_v0 = vand.u32 65535, %v2147_v52  ;;  %v2178_v59 = vshrl.u32 %v2147_v52, 16  ;;  %v2311_v44 = vmul.u32 %v2309_v38, %v4657_v20 }
 0x7b2   : > { %v2314_v21 = vmul.u32 %v2310_v1, %v4671_v39  ;;  %v2043_v32 = vmul.u32 %v4556_v48, %v4636_v24  ;;  %v4768_v54 = vmul.u32 %v5078_v47, %v4657_v20  ;;  %v2158_v40 = vmul.u32 %v2156_v16, %v2153_v23 }
 0x7b3   : > { %v2047_v12 = vsel %vm2045_vm15, %v2046_v49, %v2042_v34  ;;  %v2159_v63 = vmul.u32 %v2155_v22, %v2154_v9  ;;  %vm4770_vm0 = vc.u32 %v2311_v44, %v2315_v36  ;;  %v2120_v1 = vshrl.u32 %v5079_v62, %v4579_v11 }
 0x7b4   : > { %v2048_v52 = vadd.s32 %v2047_v12, %v2043_v32  ;;  %v2180_v58 = vmul.u32 %v2178_v59, %v2153_v23  ;;  %v2157_v55 = vmul.u32 %v2155_v22, %v2153_v23  ;;  %v2161_v45 = vshll.u32 %v2158_v40, 16 }
 0x7b5   : > { %v2181_v48 = vmul.u32 %v2177_v0, %v2154_v9  ;;  %v4779_v24 = vmul.u32 %v2309_v38, %v4671_v39  ;;  %v2160_v49 = vmul.u32 %v2156_v16, %v2154_v9  ;;  %v2179_v61 = vmul.u32 %v2177_v0, %v2153_v23 }
 0x7b6   : > { %v2049_v34 = vadd.s32 536870912, %v2048_v52  ;;  %v2183_v6 = vshll.u32 %v2180_v58, 16  ;;  %v2163_v47 = vshll.u32 %v2159_v63, 16  ;;  %vm2165_vm1 = vc.u32 %v2157_v55, %v2161_v45 }
 0x7b7   : > { %v2167_v19 = vadd.s32 %v2161_v45, %v2157_v55  ;;  %v2182_v32 = vmul.u32 %v2178_v59, %v2154_v9  ;;  %v2166_v11 = vsel %vm2165_vm1, 1, %v3905_v15  ;;  %v2185_v10 = vshll.u32 %v2181_v48, 16 }
 0x7b8   : > { %v4781_v12 = vshrl.u32 %v2049_v34, 30  ;;  %vm2187_vm7 = vc.u32 %v2179_v61, %v2183_v6  ;;  %v2189_v22 = vadd.s32 %v2183_v6, %v2179_v61  ;;  %v2168_v62 = vadd.s32 %v2166_v11, %v2160_v49 }
 0x7b9   : > { %vm2169_vm10 = vc.u32 %v2167_v19, %v2163_v47  ;;  %v2188_v14 = vsel %vm2187_vm7, 1, %v3905_v15  ;;  %v2321_v38 = vadd.s32 %v2315_v36, %v2311_v44  ;;  %v2141_v55 = vsel %vm2139_vm2, %v2129_v57, 2102212464 }
 0x7ba   : > { %v2051_v16 = vshll.u32 %v4781_v12, 30  ;;  %v2170_v23 = vsel %vm2169_vm10, 1, %v3905_v15  ;;  %v2190_v0 = vadd.s32 %v2188_v14, %v2182_v32  ;;  %v2162_v45 = vshrl.u32 %v2158_v40, 16 }
 0x7bb   : > { %v2172_v9 = vadd.s32 %v2170_v23, %v2168_v62  ;;  %vm2191_vm9 = vc.u32 %v2189_v22, %v2185_v10  ;;  %v2164_v34 = vshrl.u32 %v2159_v63, 16  ;;  %v2184_v6 = vshrl.u32 %v2180_v58, 16 }
 0x7bc   : > { %v2052_v59 = vsub.s32 %v2048_v52, %v2051_v16  ;;  %v2192_v61 = vsel %vm2191_vm9, 1, %v3905_v15  ;;  %v2317_v36 = vshll.u32 %v4779_v24, 16  ;;  %v2320_v44 = vsel %vm4770_vm0, 1, %v3905_v15 }
 0x7bd   : > { %v2173_v47 = vadd.s32 %v2172_v9, %v2162_v45  ;;  %v2194_v19 = vadd.s32 %v2192_v61, %v2190_v0  ;;  %v2140_v62 = vsel %vm2136_vm6, %v2120_v1, %v4710_v25  ;;  %v2142_v57 = vsel %vm2138_vm12, %v4719_v13, %v2141_v55 }
 0x7be   : > { %vm2053_vm11 = vcmp.lt.s32.totalorder %v2052_v59, 0  ;;  %v2054_v49 = vsub.s32 0, %v2052_v59  ;;  %v2186_v63 = vshrl.u32 %v2181_v48, 16  ;;  %vm2323_vm2 = vc.u32 %v2321_v38, %v2317_v36 }
 0x7bf   : > { %v4800_v40 = vadd.s32 %v2173_v47, %v2164_v34  ;;  %v2195_v52 = vadd.s32 %v2194_v19, %v2184_v6  ;;  %v5156_v58 = vmov 683565275   ;;  %v2322_v11 = vadd.s32 %v2320_v44, %v2314_v21 }
 0x7c0   : > { %v2274_v32 = vshrl.u32 %v5156_v58, %v4605_v41  ;;  %v2055_v8 = vsel %vm2053_vm11, %v2054_v49, %v2052_v59  ;;  %v2143_v16 = vsel %vm2137_vm14, %v2140_v62, %v2142_v57  ;;  %v4806_v23 = vadd.s32 %v2189_v22, %v2185_v10 }
 0x7c1   : > { %v2056_v14 = vclz %v2055_v8  ;;  %v2196_v25 = vadd.s32 %v2195_v52, %v2186_v63  ;;  %v2295_v13 = vsel %vm2293_vm3, %v4642_v42, 2102212464  ;;  %v2324_v1 = vsel %vm2323_vm2, 1, %v3905_v15 }
 0x7c2   : > { %v5157_v48 = vand.u32 65535, %v4697_v26  ;;  %v2337_v41 = vshll.u32 %v4768_v54, 16  ;;  %v5158_v21 = vshrl.u32 %v4697_v26, 16  ;;  %vm2199_vm6 = vc.u32 %v4800_v40, %v4806_v23 }
 0x7c3   : > { %v3487_v0 = vadd.s32 4294967294, %v2056_v14  ;;  %v2044_v22 = vadd.s32 %v4741_v3, %v4729_v43  ;;  %v2197_v55 = vmul.u32 %v4739_v53, %v2143_v16  ;;  %v2200_v45 = vadd.s32 1, %v2196_v25 }
 0x7c4   : > { %v2335_v38 = vmul.u32 %v5157_v48, %v4671_v39  ;;  %v2336_v35 = vmul.u32 %v5158_v21, %v4671_v39  ;;  %v5159_v10 = vmov %v5157_v48  ;;  %v2326_v9 = vadd.s32 %v2324_v1, %v2322_v11 }
 0x7c5   : > { %v2333_v42 = vmul.u32 %v5159_v10, %v4657_v20  ;;  %vm3488_vm3 = vcmp.lt.s32.totalorder %v3487_v0, 0  ;;  %v2316_v34 = vshrl.u32 %v4726_v37, 16  ;;  %v2201_v61 = vsel %vm2199_vm6, %v2200_v45, %v2196_v25 }
 0x7c6   : > { %v2059_v6 = vsel %vm3488_vm3, 0, %v3487_v0  ;;  %v2339_v47 = vshll.u32 %v2335_v38, 16  ;;  %v2202_v20 = vadd.s32 %v2201_v61, %v2197_v55  ;;  %v2318_v43 = vshrl.u32 %v4779_v24, 16 }
 0x7c7   : > { %vm2341_vm12 = vc.u32 %v2333_v42, %v2337_v41  ;;  %v2343_v39 = vadd.s32 %v2337_v41, %v2333_v42  ;;  %v2060_v36 = vsub.s32 32, %v2059_v6  ;;  %v2064_v26 = vsub.s32 4294967266, %v2059_v6 }
 0x7c8   : > { %v2342_v19 = vsel %vm2341_vm12, 1, %v3905_v15  ;;  %v2327_v44 = vadd.s32 %v2326_v9, %v2316_v34  ;;  %v2061_v49 = vshll.u32 %v2052_v59, %v2059_v6  ;;  %v2203_v57 = vadd.s32 536870912, %v2202_v20 }
 0x7c9   : > { %v2344_v53 = vadd.s32 %v2342_v19, %v2336_v35  ;;  %vm2345_vm14 = vc.u32 %v2343_v39, %v2339_v47  ;;  %v2062_v3 = vshrl.u32 %v2044_v22, %v2060_v36  ;;  %v2065_v62 = vadd.s32 127, %v2064_v26 }
 0x7ca   : > { %v2346_v37 = vsel %vm2345_vm14, 1, %v3905_v15  ;;  %v2294_v63 = vsel %vm2290_vm4, %v2274_v32, %v4654_v2  ;;  %v2296_v52 = vsel %vm2292_vm5, %v4640_v27, %v2295_v13  ;;  %v2338_v58 = vshrl.u32 %v4768_v54, 16 }
 0x7cb   : > { %v2348_v59 = vadd.s32 %v2346_v37, %v2344_v53  ;;  %v2063_v8 = vor.u32 %v2062_v3, %v2061_v49  ;;  %v2066_v24 = vshll.u32 %v2065_v62, 23  ;;  %v4838_v11 = vshrl.u32 %v2203_v57, 30 }
 0x7cc   : > { %v4840_v14 = vadd.s32 %v2327_v44, %v2318_v43  ;;  %v2340_v16 = vshrl.u32 %v2335_v38, 16  ;;  %v4843_v48 = vadd.s32 %v2343_v39, %v2339_v47  ;;  %v2297_v2 = vsel %vm2291_vm8, %v2294_v63, %v2296_v52 }
 0x7cd   : > { %v2349_v25 = vadd.s32 %v2348_v59, %v2338_v58  ;;  %v2067_v15 = vor.u32 4788187, %v2066_v24  ;;  %v2205_v1 = vshll.u32 %v4838_v11, 30  ;;  %v2070_v54 = vcvt.s32.f32 %v2063_v8 }
 0x7ce   : > { %vm2353_vm4 = vc.u32 %v4840_v14, %v4843_v48  ;;  %v2351_v35 = vmul.u32 %v4609_v46, %v2297_v2  ;;  %vm1952_vm15 = vcmp.lt.s32.totalorder %v4527_v30, 0  ;;  %v2074_v56 = vsub.s32 4, %v4781_v12 }
 0x7cf   : > { %v2350_v27 = vadd.s32 %v2349_v25, %v2340_v16  ;;  %v2068_v32 = vand.u32 2147483647, %v2067_v15  ;;  %v2206_v13 = vsub.s32 %v2202_v20, %v2205_v1  ;;  %v5160_v45 = vand.u32 2147483647, %v4527_v30 }
 0x7d0   : > { %v2075_v46 = vsel %vm1952_vm15, %v2074_v56, %v4781_v12  ;;  %v2198_v20 = vadd.s32 %v4806_v23, %v4800_v40  ;;  %vm2106_vm7 = vcmp.lt.s32.totalorder %v4532_v4, 0  ;;  %vm2093_vm3 = vweird.f32 %v4527_v30 }
 0x7d1   : > { %v2354_v41 = vadd.s32 1, %v2350_v27  ;;  %v2071_v21 = vmul.f32 %v2070_v54, %v2068_v32  ;;  %vm2207_vm5 = vcmp.lt.s32.totalorder %v2206_v13, 0  ;;  %v2208_v38 = vsub.s32 0, %v2206_v13 }
 0x7d2   : > { %vm1951_vm8 = vcmp.le.f32.partialorder %v5160_v45, 0.7853982  ;;  %v2352_v45 = vadd.s32 %v4843_v48, %v4840_v14  ;;  %vm2260_vm12 = vcmp.lt.s32.totalorder %v4540_v17, 0 }
 0x7d3   : > { %v2355_v0 = vsel %vm2353_vm4, %v2354_v41, %v2350_v27  ;;  %v2072_v10 = vxor.u32 2147483648, %v2071_v21  ;;  %v2209_v42 = vsel %vm2207_vm5, %v2208_v38, %v2206_v13  ;;  %v4860_v43 = vsel %vm1951_vm8, 0, %v2075_v46 }
 0x7d4   : > { %v2210_v22 = vclz %v2209_v42  ;;  %v2356_v55 = vadd.s32 %v2355_v0, %v2351_v35  ;;  %v2556_v59 = vadd.s32 3, %v4860_v43  ;;  %v5161_v42 = vand.u32 2147483647, %v4532_v4 }
 0x7d5   : > { %v2073_v9 = vsel %vm1952_vm15, %v2072_v10, %v2071_v21  ;;  %vm2247_vm4 = vweird.f32 %v4532_v4 }
 0x7d6   : > { %v2076_v34 = vsel %vm1951_vm8, %v4527_v30, %v2073_v9  ;;  %v3490_v39 = vadd.s32 4294967294, %v2210_v22  ;;  %v2357_v61 = vadd.s32 536870912, %v2356_v55  ;;  %v2557_v27 = vand.u32 3, %v2556_v59 }
 0x7d7   : > { %v2078_v6 = vmul.f32 %v2076_v34, %v2076_v34  ;;  %vm4872_vm9 = vcmp.le.f32.partialorder %v5161_v42, 0.7853982 }
 0x7d8   : > { %vm3491_vm0 = vcmp.lt.s32.totalorder %v3490_v39, 0  ;;  %v4856_v26 = vshrl.u32 %v2357_v61, 30  ;;  %vm2559_vm10 = vcmp.eq.s32.totalorder %v2557_v27, 0  ;;  %vm2562_vm2 = vcmp.eq.s32.totalorder %v2557_v27, 2 }
 0x7d9   : > { %v2079_v47 = vmul.f32 -0.001358992, %v2078_v6  ;;  %v2086_v19 = vmul.f32 -0.00019511016, %v2078_v6  ;;  %v2213_v36 = vsel %vm3491_vm0, 0, %v3490_v39  ;;  %v2228_v39 = vsub.s32 4, %v4838_v11 }
 0x7da   : > { %v2214_v44 = vsub.s32 32, %v2213_v36  ;;  %v2218_v49 = vsub.s32 4294967266, %v2213_v36  ;;  %v2359_v62 = vshll.u32 %v4856_v26, 30  ;;  %v2215_v57 = vshll.u32 %v2206_v13, %v2213_v36 }
 0x7db   : > { %v2080_v53 = vadd.f32 0.041655596, %v2079_v47  ;;  %v2087_v3 = vadd.f32 0.008332121, %v2086_v19  ;;  %vm2558_vm6 = vcmp.lt.s32.totalorder %v2557_v27, 2  ;;  %v2382_v42 = vsub.s32 4, %v4856_v26 }
 0x7dc   : > { %v2216_v37 = vshrl.u32 %v2198_v20, %v2214_v44  ;;  %v2219_v12 = vadd.s32 127, %v2218_v49  ;;  %v2360_v58 = vsub.s32 %v2356_v55, %v2359_v62 }
 0x7dd   : > { %v2081_v63 = vmul.f32 %v2080_v53, %v2078_v6  ;;  %v2088_v52 = vmul.f32 %v2087_v3, %v2078_v6  ;;  %v2229_v53 = vsel %vm2106_vm7, %v2228_v39, %v4838_v11  ;;  %v2383_v39 = vsel %vm2260_vm12, %v2382_v42, %v4856_v26 }
 0x7de   : > { %v2217_v8 = vor.u32 %v2216_v37, %v2215_v57  ;;  %v2220_v24 = vshll.u32 %v2219_v12, 23  ;;  %vm2361_vm1 = vcmp.lt.s32.totalorder %v2360_v58, 0  ;;  %v2362_v23 = vsub.s32 0, %v2360_v58 }
 0x7df   : > { %v2082_v16 = vadd.f32 -0.4999988, %v2081_v63  ;;  %v2089_v40 = vadd.f32 -0.16666654, %v2088_v52  ;;  %v2231_v52 = vsel %vm4872_vm9, 0, %v2229_v53 }
 0x7e0   : > { %v2221_v25 = vor.u32 4788187, %v2220_v24  ;;  %v2363_v2 = vsel %vm2361_vm1, %v2362_v23, %v2360_v58  ;;  %v2224_v54 = vcvt.s32.f32 %v2217_v8 }
 0x7e1   : > { %v2083_v15 = vmul.f32 %v2082_v16, %v2078_v6  ;;  %v2090_v1 = vmul.f32 %v2089_v40, %v2078_v6  ;;  %v2364_v13 = vclz %v2363_v2  ;;  %v2248_v2 = vand.u32 3, %v2231_v52 }
 0x7e2   : > { %v2222_v32 = vand.u32 2147483647, %v2221_v25  ;;  %v2711_v25 = vadd.s32 3, %v2231_v52 }
 0x7e3   : > { %v4864_v41 = vadd.f32 1.0, %v2083_v15  ;;  %v2091_v21 = vadd.f32 1.0, %v2090_v1  ;;  %v3493_v35 = vadd.s32 4294967294, %v2364_v13  ;;  %vm2249_vm5 = vcmp.lt.s32.totalorder %v2248_v2, 2 }
 0x7e4   : > { %v2225_v38 = vmul.f32 %v2224_v54, %v2222_v32  ;;  %v2712_v13 = vand.u32 3, %v2711_v25  ;;  %vm2250_vm15 = vcmp.eq.s32.totalorder %v2248_v2, 0  ;;  %vm2253_vm8 = vcmp.eq.s32.totalorder %v2248_v2, 2 }
 0x7e5   : > { %v4866_v0 = vmul.f32 %v2091_v21, %v2076_v34  ;;  %v2100_v10 = vxor.u32 2147483648, %v4864_v41  ;;  %vm3494_vm11 = vcmp.lt.s32.totalorder %v3493_v35, 0  ;;  %v5164_v21 = vand.u32 2147483647, %v4540_v17 }
 0x7e6   : > { %v2226_v22 = vxor.u32 2147483648, %v2225_v38  ;;  %v2367_v9 = vsel %vm3494_vm11, 0, %v3493_v35  ;;  %vm2713_vm0 = vcmp.lt.s32.totalorder %v2712_v13, 2  ;;  %vm2714_vm1 = vcmp.eq.s32.totalorder %v2712_v13, 0 }
 0x7e7   : > { %v2097_v55 = vxor.u32 2147483648, %v4866_v0  ;;  %v2368_v6 = vsub.s32 32, %v2367_v9  ;;  %v2372_v61 = vsub.s32 4294967266, %v2367_v9  ;;  %v2564_v47 = vsel %vm2562_vm2, %v2100_v10, %v4866_v0 }
 0x7e8   : > { %v2227_v34 = vsel %vm2106_vm7, %v2226_v22, %v2225_v38  ;;  %v2369_v44 = vshll.u32 %v2360_v58, %v2367_v9  ;;  %vm4906_vm14 = vcmp.le.f32.partialorder %v5164_v21, 0.7853982  ;;  %vm2717_vm7 = vcmp.eq.s32.totalorder %v2712_v13, 2 }
 0x7e9   : > { %v2561_v46 = vsel %vm2559_vm10, %v4864_v41, %v2097_v55  ;;  %v2230_v14 = vsel %vm4872_vm9, %v4532_v4, %v2227_v34  ;;  %v2370_v36 = vshrl.u32 %v2352_v45, %v2368_v6  ;;  %v2373_v49 = vadd.s32 127, %v2372_v61 }
 0x7ea   : > { %v2565_v48 = vsel %vm2558_vm6, %v2561_v46, %v2564_v47  ;;  %v2232_v19 = vmul.f32 %v2230_v14, %v2230_v14 }
 0x7eb   : > { %v4894_v20 = vsel %vm2093_vm3, nan, %v2565_v48  ;;  %v2371_v57 = vor.u32 %v2370_v36, %v2369_v44  ;;  %v2374_v37 = vshll.u32 %v2373_v49, 23 }
 0x7ec   : > { %2922 = vrot.lane.b32.xlu2 %v4894_v20, %s3895_s10  ;;  %v2233_v3 = vmul.f32 -0.001358992, %v2232_v19  ;;  %v2240_v62 = vmul.f32 -0.00019511016, %v2232_v19 }
 0x7ed   : > { %v2375_v59 = vor.u32 4788187, %v2374_v37  ;;  %v2378_v16 = vcvt.s32.f32 %v2371_v57  ;;  %v2385_v57 = vsel %vm4906_vm14, 0, %v2383_v39 }
 0x7ee   : > { %v2234_v12 = vadd.f32 0.041655596, %v2233_v3  ;;  %v2241_v63 = vadd.f32 0.008332121, %v2240_v62  ;;  %v2402_v4 = vand.u32 3, %v2385_v57 }
 0x7ef   : > { %v2376_v24 = vand.u32 2147483647, %v2375_v59  ;;  %v2866_v59 = vadd.s32 3, %v2385_v57 }
 0x7f0   : > { %v2235_v8 = vmul.f32 %v2234_v12, %v2232_v19  ;;  %v2242_v58 = vmul.f32 %v2241_v63, %v2232_v19  ;;  %vm2403_vm10 = vcmp.lt.s32.totalorder %v2402_v4, 2  ;;  %vm2404_vm9 = vcmp.eq.s32.totalorder %v2402_v4, 0 }
 0x7f1   : > { %v2379_v15 = vmul.f32 %v2378_v16, %v2376_v24 }
 0x7f2   : > { %v2236_v40 = vadd.f32 -0.4999988, %v2235_v8  ;;  %v2243_v23 = vadd.f32 -0.16666654, %v2242_v58 }
 0x7f3   : > { %v2380_v27 = vxor.u32 2147483648, %v2379_v15 }
 0x7f4   : > { %v2237_v1 = vmul.f32 %v2236_v40, %v2232_v19  ;;  %v2244_v11 = vmul.f32 %v2243_v23, %v2232_v19  ;;  %v2867_v40 = vand.u32 3, %v2866_v59 }
 0x7f5   : > { %v2381_v35 = vsel %vm2260_vm12, %v2380_v27, %v2379_v15  ;;  %v2094_v15 = vand.u32 3, %v4860_v43  ;;  %vm2407_vm12 = vcmp.eq.s32.totalorder %v2402_v4, 2  ;;  %v2882_v27 = vld [vmem:[%s5167_s28 + $0x10] sm:$0xff] }
 0x7f6   : > { %v2238_v32 = vadd.f32 1.0, %v2237_v1  ;;  %v2245_v54 = vadd.f32 1.0, %v2244_v11  ;;  %v2384_v45 = vsel %vm4906_vm14, %v4540_v17, %v2381_v35  ;;  %vm2868_vm11 = vcmp.lt.s32.totalorder %v2867_v40, 2 }
 0x7f7   : > { %v2386_v9 = vmul.f32 %v2384_v45, %v2384_v45  ;;  %vm2869_vm2 = vcmp.eq.s32.totalorder %v2867_v40, 0  ;;  %vm2872_vm6 = vcmp.eq.s32.totalorder %v2867_v40, 2  ;;  %vm2096_vm14 = vcmp.eq.s32.totalorder %v2094_v15, 0 }
 0x7f8   : > { %v2246_v56 = vmul.f32 %v2245_v54, %v2230_v14  ;;  %v2254_v22 = vxor.u32 2147483648, %v2238_v32  ;;  %v4923_v14 = vld [vmem:[%s5167_s28 + $0x8] sm:$0xff]  ;;  %v2098_v21 = vsel %vm2096_vm14, %v4864_v41, %v2097_v55  ;;  %v2880_v55 = vld [vmem:[%s5167_s28] sm:$0xff]  ;;  %v5168_v41 = vunpack.c.l.bf16 %v4320_v29 }
 0x7f9   : > { %v2387_v6 = vmul.f32 -0.001358992, %v2386_v9  ;;  %v2394_v61 = vmul.f32 -0.00019511016, %v2386_v9  ;;  %v2898_v30 = vmul.f32 %v2880_v55, %v4894_v20 }
 0x7fa   : > { %v2251_v34 = vxor.u32 2147483648, %v2246_v56  ;;  %v2719_v47 = vsel %vm2717_vm7, %v2254_v22, %v2246_v56  ;;  %v2255_v19 = vsel %vm2253_vm8, %v2254_v22, %v2246_v56  ;;  %vm3129_vm8 = vcmask 48128  }
 0x7fb   : > { %v2388_v49 = vadd.f32 0.041655596, %v2387_v6  ;;  %v2395_v53 = vadd.f32 0.008332121, %v2394_v61 }
 0x7fc   : > { %v2716_v46 = vsel %vm2714_vm1, %v2238_v32, %v2251_v34  ;;  %v2252_v48 = vsel %vm2250_vm15, %v2238_v32, %v2251_v34  ;;  %vm2095_vm15 = vcmp.lt.s32.totalorder %v2094_v15, 2 }
 0x7fd   : > { %v2720_v36 = vsel %vm2713_vm0, %v2716_v46, %v2719_v47  ;;  %v2256_v44 = vsel %vm2249_vm5, %v2252_v48, %v2255_v19  ;;  %v2389_v37 = vmul.f32 %v2388_v49, %v2386_v9  ;;  %v2396_v12 = vmul.f32 %v2395_v53, %v2386_v9 }
 0x7fe   : > { %v2721_v3 = vsel %vm2247_vm4, nan, %v2720_v36  ;;  %v2257_v26 = vsel %vm2247_vm4, nan, %v2256_v44  ;;  %vm2401_vm4 = vweird.f32 %v4540_v17  ;;  %vm2099_vm5 = vcmp.eq.s32.totalorder %v2094_v15, 2 }
 0x7ff   : > { %2924 = vrot.lane.b32.xlu2 %v2721_v3, %s3895_s10  ;;  %v2935_v62 = vmul.f32 %v4923_v14, %v2257_v26  ;;  %v2390_v63 = vadd.f32 -0.4999988, %v2389_v37  ;;  %v2397_v52 = vadd.f32 -0.16666654, %v2396_v12  ;;  %v2101_v56 = vsel %vm2099_vm5, %v2100_v10, %v4866_v0 }
 0x800   : > { %v2102_v17 = vsel %vm2095_vm15, %v2098_v21, %v2101_v56  ;;  %v2899_v34 = vmul.f32 %v4923_v14, %v2721_v3  ;;  %v5169_v0 = vunpack.c.h.bf16 %v4320_v29  ;;  %v5170_v10 = vunpack.c.l.bf16 %v4337_v33 }
 0x801   : > { %2942 = vrot.lane.b32.xlu0 %v2935_v62, %s3895_s10  ;;  %v2391_v8 = vmul.f32 %v2390_v63, %v2386_v9  ;;  %v2398_v58 = vmul.f32 %v2397_v52, %v2386_v9  ;;  %v2103_v22 = vsel %vm2093_vm3, nan, %v2102_v17  ;;  %v3910_v21 = vmov 6  }
 0x802   : > { %v2934_v9 = vmul.f32 %v2880_v55, %v2103_v22  ;;  %3654 = vset.pattern.permute.xlu1 %v3910_v21  ;;  %3656 = vset.pattern.permute.xlu0 %v3910_v21  ;;  %vm1817_vm3 = vcmp.eq.s32.totalorder %v4484_v7, 4 }
 0x803   : > { %v2392_v24 = vadd.f32 1.0, %v2391_v8  ;;  %v2399_v16 = vadd.f32 1.0, %v2398_v58 }
 0x805   : > { %v2400_v23 = vmul.f32 %v2399_v16, %v2384_v45  ;;  %v2408_v25 = vxor.u32 2147483648, %v2392_v24 }
 0x807   : > { %v2405_v1 = vxor.u32 2147483648, %v2400_v23  ;;  %v2874_v2 = vsel %vm2872_vm6, %v2408_v25, %v2400_v23  ;;  %v2409_v54 = vsel %vm2407_vm12, %v2408_v25, %v2400_v23 }
 0x809   : > { %v2871_v11 = vsel %vm2869_vm2, %v2392_v24, %v2405_v1  ;;  %v2406_v32 = vsel %vm2404_vm9, %v2392_v24, %v2405_v1 }
 0x80a   : > { %v2875_v13 = vsel %vm2868_vm11, %v2871_v11, %v2874_v2  ;;  %v2410_v43 = vsel %vm2403_vm10, %v2406_v32, %v2409_v54 }
 0x80b   : > { %v2876_v38 = vsel %vm2401_vm4, nan, %v2875_v13  ;;  %v2411_v35 = vsel %vm2401_vm4, nan, %v2410_v43 }
 0x80c   : > { %2926 = vrot.lane.b32.xlu2 %v2876_v38, %s3895_s10  ;;  %2890 = vrot.lane.b32.xlu0 %v2411_v35, %s3895_s10  ;;  %v2936_v42 = vmul.f32 %v2882_v27, %v2411_v35  ;;  %v2900_v45 = vmul.f32 %v2882_v27, %v2876_v38 }
 0x80e   : > { %2944 = vrot.lane.b32.xlu1 %v2936_v42, %s3895_s10 }
 0x814   : > { %2908 = vrot.lane.b32.xlu0 %v2900_v45, %s3895_s10 }
 0x816   : > { %2940 = vrot.lane.b32.xlu1 %v2934_v9, %s3895_s10 }
 0x81c   : > { %2906 = vrot.lane.b32.xlu0 %v2899_v34, %s3895_s10 }
 0x81e   : > { %2888 = vrot.lane.b32.xlu1 %v2257_v26, %s3895_s10 }
 0x824   : > { %3039 = vrot.lane.b32.xlu0 %v4500_v50, %s3906_s30 }
 0x826   : > { %2886 = vrot.lane.b32.xlu1 %v2103_v22, %s3895_s10  ;;  %v5171_v22 = vmov 7  }
 0x82e   : > { %2904 = vrot.lane.b32.xlu1 %v2898_v30, %s3895_s10  ;;  %s3907_s10 = smov 5  }
 0x832   : > { %2955 = vxpose.xlu2.b32.start [1/3] (short) (narrow) %v5168_v41, 16  ;;  %v3911_v41 = vmov 4  }
 0x836   : > { %3041 = vrot.lane.b32.xlu1 %v4502_v51, %s3906_s30 }
 0x83a   : > { %2956 = vxpose.xlu2.b32.cont [2/3] (short) (narrow) %v5169_v0, 16 }
 0x842   : > { %2957 = vxpose.xlu2.b32.end [3/3] (short) (narrow) %v5170_v10, 16 }
 0x846   : > { %v2923_v39 = vpop.permute.xlu2 %2922 }
 0x847   : > { %v2931_v33 = vmul.f32 %v2923_v39, %v2880_v55 }
 0x859   : > { %v2925_v6 = vpop.permute.xlu2 %2924 }
 0x85a   : > { %v2932_v20 = vmul.f32 %v2925_v6, %v4923_v14 }
 0x866   : > { %v2927_v46 = vpop.permute.xlu2 %2926 }
 0x867   : > { %v2933_v48 = vmul.f32 %v2927_v46, %v2882_v27 }
 0x873   : > { %v2943_v61 = vpop.permute.xlu0 %2942 }
 0x874   : > { %v2950_v36 = vsub.f32 %v2932_v20, %v2943_v61  ;;  %v5172_v61 = vmov 0.0   ;;  %v5173_v20 = vld [vmem:[#allocation20_spill] sm:$0xff] }
 0x876   : > { %v2953_v29 = vmul.f32 %v2950_v36, %v4534_v5 }
 0x87e   : > { %v2891_v47 = vpop.permute.xlu0 %2890 }
 0x87f   : > { %v2897_v53 = vmul.f32 %v2891_v47, %v2882_v27 }
 0x880   : > { %v2945_v19 = vpop.permute.xlu1 %2944 }
 0x881   : > { %v2951_v44 = vsub.f32 %v2933_v48, %v2945_v19 }
 0x883   : > { %v2954_v49 = vmul.f32 %v2951_v44, %v4542_v18 }
 0x885   : > { %3029 = vmatpush.msrb.mxu2 %v2954_v49 }
 0x886   : > { %v2909_v3 = vpop.permute.xlu0 %2908 }
 0x887   : > { %3030 = vmatpush.msrb.mxu2 %v2953_v29  ;;  %v2915_v26 = vadd.f32 %v2909_v3, %v2897_v53 }
 0x888   : > { %v2941_v62 = vpop.permute.xlu1 %2940 }
 0x889   : > { %v2949_v57 = vsub.f32 %v2931_v33, %v2941_v62  ;;  %v2918_v37 = vmul.f32 %v2915_v26, %v4542_v18 }
 0x88b   : > { %3006 = vmatpush.msrb.mxu1 %v2918_v37  ;;  %v2952_v12 = vmul.f32 %v2949_v57, %v4529_v60 }
 0x88d   : > { %3031 = vmatpush.msrb.mxu2 %v2952_v12 }
 0x88e   : > { %v2907_v59 = vpop.permute.xlu0 %2906 }
 0x890   : > { %v2889_v63 = vpop.permute.xlu1 %2888 }
 0x891   : > { %v2896_v52 = vmul.f32 %v2889_v63, %v4923_v14 }
 0x893   : > { %v2914_v8 = vadd.f32 %v2907_v59, %v2896_v52 }
 0x895   : > { %v2917_v58 = vmul.f32 %v2914_v8, %v4534_v5 }
 0x896   : > { %v3040_v15 = vpop.permute.xlu0 %3039 }
 0x897   : > { %3007 = vmatpush.msrb.mxu1 %v2917_v58  ;;  %v3045_v1 = vsub.f32 %v4500_v50, %v3040_v15 }
 0x898   : > { %v2887_v24 = vpop.permute.xlu1 %2886 }
 0x899   : > { %v2895_v16 = vmul.f32 %v2887_v24, %v2880_v55 }
 0x8a0   : > { %v2905_v4 = vpop.permute.xlu1 %2904 }
 0x8a1   : > { %v2913_v40 = vadd.f32 %v2905_v4, %v2895_v16 }
 0x8a3   : > { %v2916_v23 = vmul.f32 %v2913_v40, %v4529_v60 }
 0x8a5   : > { %3008 = vmatpush.msrb.mxu1 %v2916_v23 }
 0x8a8   : > { %v3042_v60 = vpop.permute.xlu1 %3041 }
 0x8a9   : > { %v3046_v27 = vsub.f32 %v4502_v51, %v3042_v60 }
 0x8cb   : > { %v2971_v18 = vpop.trf.xlu2 }
 0x8cc   : > { %3506 = vmatmul.msk.f32.vlgmr.msrb.gmra.mxu2 %vm1485_vm13, %v2971_v18  ;;  %3504 = vmatmul.msk.f32.vlgmr.msrb.gmra.mxu1 %vm1485_vm13, %v2971_v18 }
 0x8d3   : > { %v2972_v25 = vpop.trf.xlu2 }
 0x8d4   : > { %3507 = vmatmul.msk.f32.gmra.mxu2 %vm1485_vm13, %v2972_v25  ;;  %3505 = vmatmul.msk.f32.gmra.mxu1 %vm1485_vm13, %v2972_v25  ;;  %vm1814_vm13 = vcmp.eq.s32.totalorder %v4484_v7, 5 }
 0x8d5   : > { %v3478_v46 = vsel %vm1814_vm13, 1.0, %v5172_v61 }
 0x949   : > { %v3010_v13 = vpop.f32.mrf.mxu1 }
 0x94f   : > { %v3033_v14 = vpop.f32.mrf.mxu2 }
 0x950   : > { %3059 = vrot.lane.b32.xlu0 %v3033_v14, %s3907_s10 }
 0x951   : > { %v3013_v43 = vpop.f32.mrf.mxu1 }
 0x957   : > { %v3036_v5 = vpop.f32.mrf.mxu2 }
 0x958   : > { %3061 = vrot.lane.b32.xlu1 %v3036_v5, %s3907_s10 }
 0x9c2   : > { %v3060_v11 = vpop.permute.xlu0 %3059 }
 0x9c3   : > { %v3065_v2 = vsub.f32 %v3045_v1, %v3060_v11 }
 0x9c5   : > { %3089 = vrot.lane.b32.xlu2 %v3065_v2, %s3908_s23  ;;  %3069 = vrot.lane.b32.xlu0 %v3065_v2, %s3909_s25 }
 0x9ca   : > { %v3062_v32 = vpop.permute.xlu1 %3061 }
 0x9cb   : > { %v3066_v54 = vsub.f32 %v3046_v27, %v3062_v32 }
 0x9cd   : > { %3091 = vrot.lane.b32.xlu0 %v3066_v54, %s3908_s23  ;;  %3071 = vrot.lane.b32.xlu1 %v3066_v54, %s3909_s25 }
 0x9d5   : > { %3051 = vrot.lane.b32.xlu0 %v3013_v43, %s3906_s30  ;;  %3049 = vrot.lane.b32.xlu1 %v3010_v13, %s3906_s30 }
 0xa1f   : > { %v3090_v42 = vpop.permute.xlu2 %3089 }
 0xa20   : > { %v3095_v55 = vmul.f32 %v4454_v28, %v3090_v42 }
 0xa37   : > { %v3070_v38 = vpop.permute.xlu0 %3069 }
 0xa38   : > { %v3075_v35 = vmul.f32 %v4454_v28, %v3070_v38 }
 0xa3a   : > { %3079 = vperm.xlu1 %3654, %v3075_v35  }
 0xa3f   : > { %v3072_v56 = vpop.permute.xlu1 %3071  ;;  %v3092_v45 = vpop.permute.xlu0 %3091 }
 0xa40   : > { %v3076_v17 = vmul.f32 %v4457_v31, %v3072_v56  ;;  %v3096_v30 = vmul.f32 %v4457_v31, %v3092_v45  ;;  %v3479_v31 = vsel %vm1817_vm3, 1.0, %v5172_v61 }
 0xa42   : > { %3655 = vset.pattern.permute.xlu1 %v5171_v22  ;;  %3084 = vperm.xlu0 %3656, %v3076_v17  }
 0xa43   : > { %3099 = vperm.xlu1 %3655, %v3095_v55  }
 0xa47   : > { %v3050_v9 = vpop.permute.xlu1 %3049  ;;  %v3052_v0 = vpop.permute.xlu0 %3051 }
 0xa48   : > { %v3055_v34 = vsub.f32 %v3045_v1, %v3050_v9  ;;  %v3056_v10 = vsub.f32 %v3046_v27, %v3052_v0 }
 0xa4a   : > { %3657 = vset.pattern.permute.xlu0 %v3911_v41 }
 0xa4b   : > { %3104 = vperm.xlu1 %3655, %v3096_v30   ;;  %3113 = vperm.xlu0 %3657, %v3055_v34  }
 0xa53   : > { %3658 = vset.pattern.permute.xlu1 %v3911_v41 }
 0xa54   : > { %3118 = vperm.xlu1 %3658, %v3056_v10  }
 0xaac   : > { %v3080_v39 = vpop.permute.xlu1 %3079 }
 0xaad   : > { %v3087_v48 = vmul.f32 %v5173_v20, %v3080_v39 }
 0xab4   : > { %v3085_v6 = vpop.permute.xlu0 %3084 }
 0xab5   : > { %v3100_v28 = vpop.permute.xlu1 %3099  ;;  %v3088_v26 = vmul.f32 %v5173_v20, %v3085_v6 }
 0xab6   : > { %v3107_v47 = vmul.f32 %v3478_v46, %v3100_v28 }
 0xab8   : > { %v3109_v44 = vadd.f32 %v3107_v47, %v3087_v48 }
 0xabd   : > { %v3114_v19 = vpop.permute.xlu0 %3113  ;;  %v3105_v36 = vpop.permute.xlu1 %3104 }
 0xabe   : > { %v3121_v49 = vmul.f32 %v3479_v31, %v3114_v19  ;;  %v3108_v3 = vmul.f32 %v3478_v46, %v3105_v36 }
 0xac0   : > { %v3123_v53 = vadd.f32 %v3121_v49, %v3109_v44  ;;  %v3110_v62 = vadd.f32 %v3108_v3, %v3088_v26 }
 0xac2   : > { %v3125_v29 = vmul.f32 0.05, %v3123_v53 }
 0xac4   : > { %v3127_v33 = vadd.f32 %v3125_v29, %v4500_v50 }
 0xac6   : > { %3130 = vst.msk [vmem:[%s5174_s7] sm:$0xff] %vm3129_vm8, %v3127_v33  ;;  %v3119_v7 = vpop.permute.xlu1 %3118 }
 0xac7   : > { %v3122_v57 = vmul.f32 %v3479_v31, %v3119_v7 }
 0xac9   : > { %v3124_v37 = vadd.f32 %v3122_v57, %v3110_v62 }
 0xacb   : > { %v3126_v12 = vmul.f32 0.05, %v3124_v37 }
 0xacd   : > { %v3128_v63 = vadd.f32 %v3126_v12, %v4502_v51 }
 0xacf   : > { %3131 = vst.msk [vmem:[%s5175_s26 + $0x8] sm:$0xff] %vm3129_vm8, %v3128_v63 }
 0xad0 PF: > { %s5176_s30 = sld [smem:[#allocation18_spill]]  ;;  %s5179_s7 = smov %s3881_s4 }
 0xad1   : > { %s5177_s19 = sld [smem:[#allocation17_spill]] }
 0xad2   : > { %s5178_s8 = sld [smem:[#allocation19_spill]] }
 0xad6   : > { %p46_p5 = scmp.ge.s32.totalorder %s5176_s30, 7  }
 0xad7   : > { %s5180_s4 = smov %s5177_s19 }
 0xad8   :  { %48 = sbr.rel (!%p46_p5) target bundleno = 35 (0x23), region = 248 }
 0xadd   :  { %3143 = vsyncpa [#allocation4], 1 }
 0xade   :  { %3145 = vsyncpa [#allocation4 + $0x1], 1 }
 0xadf   :  { %3146 = vsyncpa [#allocation6], 1 }
 0xae0   :  { %3148 = vsyncpa [#allocation6 + $0x1], 1 }
 0xae1   :  { %3149 = vsyncpa [#allocation9], 1 }
 0xae2   :  { %3151 = vsyncpa [#allocation9 + $0x1], 1 }
 0xae3   :  { %3152 = vsyncpa [#allocation12], 1 }
 0xae4   :  { %3154 = vsyncpa [#allocation12 + $0x1], 1 }

</bundles_post_ra>
